<compile_context>
chip_gen: v5e
topology: v5e:2x2
jax: 0.10.0
libtpu: 0.0.40
codegen_flags: <defaults>
</compile_context>

<pallas_src>
import functools
import math

import jax
import jax.numpy as jnp
from jax import lax
from jax.experimental import pallas as pl
from jax.experimental.pallas import tpu as pltpu


# ------------------------------ fused kernel ----------------------------------
def gmn_block_kernel(
    nf_ref, ef_ref, from_loc_ref, to_loc_ref, spool_ref,
    wn_ref, bn_ref, we_ref, be_ref,
    w1_fs_ref, w1_ts_ref, w1_ef_ref, b1_ref,
    w2_ref, b2_ref,
    wu1_msg_ref, wu1_node_ref, bu1_ref, wu2_ref, bu2_ref,
    wa1_ref, ba1_ref, wa2_ref,
    score_ref, *, n_prop_layers, msg_dim, graph_dim):
    f32 = jnp.float32
    bf16 = jnp.bfloat16

    eb = from_loc_ref.shape[0]        # edges per block (k pairs)
    nb = nf_ref.shape[0]              # nodes per block (k pairs)

    # Gather/scatter one-hots built IN-KERNEL from int32 index columns
    # (iota + compare on the VPU, bf16 0/1 values are exact).  The batch's
    # block-diagonal structure emerges automatically from the block-local indices.
    node_iota = lax.broadcasted_iota(jnp.int32, (eb, nb), 1)
    from_oh = (node_iota == from_loc_ref[...]).astype(bf16)     # (eb, nb)
    to_oh = (node_iota == to_loc_ref[...]).astype(bf16)         # (eb, nb)

    # ---------------- encoder (bf16 MXU operands, f32 accumulate) ----------------
    ns = jnp.dot(nf_ref[...], wn_ref[...], preferred_element_type=f32) + bn_ref[...]
    ef = jnp.dot(ef_ref[...], we_ref[...], preferred_element_type=f32) + be_ref[...]

    # Loop-invariant edge contribution to the fwd||rev 128-lane message hidden,
    # with the combined bias folded in (hoisted out of the prop loop).
    ef_h = (jnp.dot(ef.astype(bf16), w1_ef_ref[...], preferred_element_type=f32)
            + b1_ref[...])                                      # (eb, 2*M)

    w1_fs = w1_fs_ref[...]
    w1_ts = w1_ts_ref[...]
    w2 = w2_ref[...]
    b2 = b2_ref[...]
    wu1_msg = wu1_msg_ref[...]
    wu1_node = wu1_node_ref[...]
    bu1 = bu1_ref[...]
    wu2 = wu2_ref[...]
    bu2 = bu2_ref[...]

    def prop(ns):
        ns_bf = ns.astype(bf16)
        # Gather endpoint states (one-hot matmul == node_states[idx]); bf16 MXU.
        fs = jnp.dot(from_oh, ns_bf, preferred_element_type=f32)    # (eb, D)
        ts = jnp.dot(to_oh, ns_bf, preferred_element_type=f32)      # (eb, D)
        # Combined forward||reverse message net, single 128-lane hidden.
        h = jnp.maximum(
            jnp.dot(fs.astype(bf16), w1_fs, preferred_element_type=f32)
            + jnp.dot(ts.astype(bf16), w1_ts, preferred_element_type=f32)
            + ef_h, 0.0)                                             # (eb, 2*M)
        # One block-diagonal (2M, 2M) matmul -> [msg_f || msg_r]; lane-64 split.
        msg = jnp.dot(h.astype(bf16), w2, preferred_element_type=f32) + b2
        msg_f = msg[:, :msg_dim].astype(bf16)
        msg_r = msg[:, msg_dim:].astype(bf16)
        # Scatter-sum with no transposed copies: contract the edge axis directly.
        agg = (lax.dot_general(to_oh, msg_f, (((0,), (0,)), ((), ())),
                               preferred_element_type=f32)
               + lax.dot_general(from_oh, msg_r, (((0,), (0,)), ((), ())),
                                 preferred_element_type=f32))        # (nb, M)
        # Residual node update.
        hu = jnp.maximum(
            jnp.dot(agg.astype(bf16), wu1_msg, preferred_element_type=f32)
            + jnp.dot(ns_bf, wu1_node, preferred_element_type=f32) + bu1, 0.0)
        return ns + jnp.dot(hu.astype(bf16), wu2, preferred_element_type=f32) + bu2

    for _ in range(n_prop_layers):        # shared prop-layer params
        ns = prop(ns)

    # --------- gated aggregator: ONE full-width wa1 matmul + lane-64 split ---------
    ns_g = (jnp.dot(ns.astype(bf16), wa1_ref[...], preferred_element_type=f32)
            + ba1_ref[...])                                          # (nb, 2*GD)
    gates = jax.nn.sigmoid(ns_g[:, :graph_dim])
    gated = gates * ns_g[:, graph_dim:]                              # (nb, GD)

    # Signed per-pair pooling (+1 query node, -1 corpus node): a single matmul
    # gives (query graph sum) - (corpus graph sum) per pair; the graph-transform
    # bias cancels in the difference and wa2 is linear, so it applies to the
    # difference directly.  Score is then lane-dense: one store per block.
    gdiff = jnp.dot(spool_ref[...], gated.astype(bf16),
                    preferred_element_type=f32)                      # (k, GD)
    d = jnp.dot(gdiff.astype(bf16), wa2_ref[...], preferred_element_type=f32)  # (k, GOUT)
    score = -jnp.sum(d * d, axis=-1)                                 # (k,)
    score_ref[...] = score.reshape(score_ref.shape)                  # (1, 1, k)


# ------------------------------ specs / wrapper --------------------------------
def _resident_spec(x):
    # Whole-array block, constant index map -> stays resident across grid steps.
    return pl.BlockSpec(tuple(x.shape), lambda b, nd=x.ndim: (0,) * nd)


def _choose_pairs_per_block(n_pairs, npp, epp):
    """Pairs per grid block.

    Targets >=128 edge rows per block (MXU fill), keeps >=2 grid steps when
    possible so dimension_semantics=("parallel",) can split blocks across
    v7x's two TensorCores, and caps the O(k^2) in-kernel one-hot VMEM
    against the tightest chip (v7x: 64 MiB physical / 32 MiB scoped default).
    """
    k = max(1, min(n_pairs, pl.cdiv(128, epp)))
    if n_pairs >= 2:
        k = max(1, min(k, n_pairs // 2))
    def onehot_bytes(kk):                       # two bf16 (k*epp, k*npp) one-hots
        return 2 * (kk * epp) * (kk * npp) * 2
    while k > 1 and onehot_bytes(k) > 8 * 1024 * 1024:
        k -= 1
    while n_pairs % k:
        k -= 1
    return k


def fuse_params(p, dtype=jnp.bfloat16):
    """Lane-dense fused weights used by the kernel (bf16 MXU operands, f32 biases)."""
    f32 = jnp.float32
    q = {}
    # combined forward||reverse message net (hidden = 2*H_MSG = 128 lanes)
    q["w1_fs"] = jnp.concatenate([p["w1f_from"], p["w1r_to"]], axis=1).astype(dtype)
    q["w1_ts"] = jnp.concatenate([p["w1f_to"], p["w1r_from"]], axis=1).astype(dtype)
    q["w1_ef"] = jnp.concatenate([p["w1f_edge"], p["w1r_edge"]], axis=1).astype(dtype)
    q["b1"] = jnp.concatenate([p["b1f"], p["b1r"]], axis=1).astype(f32)
    # block-diagonal second message layer: one (2H, 2M) matmul -> [msg_f || msg_r]
    hf, mf = p["w2f"].shape
    hr, mr = p["w2r"].shape
    q["w2"] = jnp.concatenate(
        [jnp.concatenate([p["w2f"], jnp.zeros((hf, mr), f32)], axis=1),
         jnp.concatenate([jnp.zeros((hr, mf), f32), p["w2r"]], axis=1)],
        axis=0).astype(dtype)
    q["b2"] = jnp.concatenate([p["b2f"], p["b2r"]], axis=1).astype(f32)
    return q


def gmn_embed_forward(node_features, edge_features, from_idx, to_idx, graph_idx,
                      n_graphs, params, n_prop_layers):
    f32, bf16 = jnp.float32, jnp.bfloat16
    N, in_node = node_features.shape
    E, in_edge = edge_features.shape
    assert n_graphs % 2 == 0
    n_pairs = n_graphs // 2                  # number of (query, corpus) graph pairs
    # Block-diagonal batch structure: a pair's edges only touch that pair's nodes.
    # TODO(synk): assumes uniform graph sizes and graph-contiguous node/edge ordering
    # (true for this scaffold); ragged batches would need per-pair padding/masking.
    assert N % n_graphs == 0 and E % n_graphs == 0
    npg = N // n_graphs                      # nodes per graph
    npp = 2 * npg                            # nodes per pair
    epp = E // n_pairs                       # edges per pair

    k = _choose_pairs_per_block(n_pairs, npp, epp)
    num_blocks = n_pairs // k
    nb, eb = k * npp, k * epp                # nodes / edges per grid block

    # Block-local int32 endpoint indices (one-hots are built in-kernel).
    block_of_edge = jnp.arange(E, dtype=jnp.int32) // eb
    from_loc = (from_idx.astype(jnp.int32) - block_of_edge * nb).reshape(E, 1)
    to_loc = (to_idx.astype(jnp.int32) - block_of_edge * nb).reshape(E, 1)

    # Signed per-pair pooling matrix (+1 for query-graph nodes, -1 for corpus-graph
    # nodes of the same pair); identical for every block -> loaded once, resident.
    j = jnp.arange(nb)
    sign = jnp.where((j // npg) % 2 == 0, 1.0, -1.0)
    spool = (jax.nn.one_hot(j // npp, k, dtype=f32) * sign[:, None]).T.astype(bf16)

    p = params
    q = fuse_params(p)

    ops = [node_features.astype(bf16), edge_features.astype(bf16),
           from_loc, to_loc, spool,
           p["enc_wn"].astype(bf16), p["enc_bn"],
           p["enc_we"].astype(bf16), p["enc_be"],
           q["w1_fs"], q["w1_ts"], q["w1_ef"], q["b1"],
           q["w2"], q["b2"],
           p["wu1_msg"].astype(bf16), p["wu1_node"].astype(bf16), p["bu1"],
           p["wu2"].astype(bf16), p["bu2"],
           p["wa1"].astype(bf16), p["ba1"], p["wa2"].astype(bf16)]

    in_specs = [pl.BlockSpec((nb, in_node), lambda b: (b, 0)),
                pl.BlockSpec((eb, in_edge), lambda b: (b, 0)),
                pl.BlockSpec((eb, 1), lambda b: (b, 0)),
                pl.BlockSpec((eb, 1), lambda b: (b, 0))]
    in_specs += [_resident_spec(x) for x in ops[4:]]

    kernel = functools.partial(gmn_block_kernel,
                               n_prop_layers=n_prop_layers,
                               msg_dim=p["w2f"].shape[1],
                               graph_dim=p["wa2"].shape[0])
    scores = pl.pallas_call(
        kernel,
        out_shape=jax.ShapeDtypeStruct((num_blocks, 1, k), f32),
        grid_spec=pltpu.PrefetchScalarGridSpec(
            num_scalar_prefetch=0,
            grid=(num_blocks,),
            in_specs=in_specs,
            # Lane-dense score output: one (1, 1, k) store per block.
            out_specs=pl.BlockSpec((1, 1, k), lambda b: (b, 0, 0)),
        ),
        compiler_params=pltpu.CompilerParams(
            # blocks of pairs are independent -> both TensorCores on v7x,
            # no-op on v5e/v6e
            dimension_semantics=("parallel",),
        ),
    )(*ops)
    return scores.reshape(-1)                # (n_pairs,) in pair order


# --------------------------- pure-JAX reference --------------------------------
def reference_forward(node_features, edge_features, from_idx, to_idx, graph_idx,
                      n_graphs, p, n_prop_layers):
    hp = jax.lax.Precision.HIGHEST

    def mm(a, b):
        return jnp.dot(a, b, precision=hp)

    gd = p["wa1"].shape[1] // 2
    nf = mm(node_features, p["enc_wn"]) + p["enc_bn"]
    ef = mm(edge_features, p["enc_we"]) + p["enc_be"]
    ns = nf
    for _ in range(n_prop_layers):
        fs = ns[from_idx]
        ts = ns[to_idx]
        hf = jax.nn.relu(mm(fs, p["w1f_from"]) + mm(ts, p["w1f_to"])
                         + mm(ef, p["w1f_edge"]) + p["b1f"])
        mf = mm(hf, p["w2f"]) + p["b2f"]
        agg = jax.ops.segment_sum(mf, to_idx, num_segments=ns.shape[0])
        hr = jax.nn.relu(mm(ts, p["w1r_from"]) + mm(fs, p["w1r_to"])
                         + mm(ef, p["w1r_edge"]) + p["b1r"])
        mr = mm(hr, p["w2r"]) + p["b2r"]
        agg = agg + jax.ops.segment_sum(mr, from_idx, num_segments=ns.shape[0])
        hu = jax.nn.relu(mm(agg, p["wu1_msg"]) + mm(ns, p["wu1_node"]) + p["bu1"])
        ns = ns + mm(hu, p["wu2"]) + p["bu2"]
    ns_g = mm(ns, p["wa1"]) + p["ba1"]
    gates = jax.nn.sigmoid(ns_g[:, :gd])
    gated = gates * ns_g[:, gd:]
    gs = jax.ops.segment_sum(gated, graph_idx, num_segments=n_graphs)
    gv = mm(gs, p["wa2"]) + p["ba2"]
    x = gv[0::2]
    y = gv[1::2]
    return -jnp.sum((x - y) ** 2, axis=-1)   # -euclidean_distance(x, y)


# --------------------------------- params --------------------------------------
def init_params(key, in_node, in_edge, d, de, h_msg, m, h_upd, gd, gout):
    keys = iter(jax.random.split(key, 32))

    def w(din, dout):
        return (jax.random.normal(next(keys), (din, dout), jnp.float32)
                * (0.5 / math.sqrt(din)))

    def b(dout):
        return jnp.zeros((1, dout), jnp.float32)

    p = {}
    p["enc_wn"], p["enc_bn"] = w(in_node, d), b(d)
    p["enc_we"], p["enc_be"] = w(in_edge, de), b(de)
    # forward message net (split concat weight)
    p["w1f_from"], p["w1f_to"], p["w1f_edge"], p["b1f"] = w(d, h_msg), w(d, h_msg), w(de, h_msg), b(h_msg)
    p["w2f"], p["b2f"] = w(h_msg, m), b(m)
    # reverse message net
    p["w1r_from"], p["w1r_to"], p["w1r_edge"], p["b1r"] = w(d, h_msg), w(d, h_msg), w(de, h_msg), b(h_msg)
    p["w2r"], p["b2r"] = w(h_msg, m), b(m)
    # node update MLP (residual)
    p["wu1_msg"], p["wu1_node"], p["bu1"] = w(m, h_upd), w(d, h_upd), b(h_upd)
    p["wu2"], p["bu2"] = w(h_upd, d), b(d)
    # aggregator (gated) + graph transform
    p["wa1"], p["ba1"] = w(d, 2 * gd), b(2 * gd)
    p["wa2"], p["ba2"] = w(gd, gout), b(gout)
    return p


if __name__ == "__main__":
    # Small synthetic batch of B=4 graph pairs -> 8 graphs, 8 nodes / 16 edges each.
    B = 4
    N_GRAPHS = 2 * B
    NODES_PER_GRAPH = 8
    EDGES_PER_GRAPH = 16
    N = N_GRAPHS * NODES_PER_GRAPH
    E = N_GRAPHS * EDGES_PER_GRAPH

    IN_NODE, IN_EDGE = 8, 4
    D, DE = 32, 16          # node state dim / encoded edge dim
    H_MSG, M = 64, 64       # message net hidden / output dim
    H_UPD = 64              # node update hidden
    GD, GOUT = 64, 64       # graph state dim / graph transform output dim
    N_PROP_LAYERS = 3

    key = jax.random.PRNGKey(0)
    k_nf, k_ef, k_from, k_to, k_param = jax.random.split(key, 5)

    node_features = jax.random.normal(k_nf, (N, IN_NODE), jnp.float32)
    edge_features = jax.random.normal(k_ef, (E, IN_EDGE), jnp.float32)

    local_from = jax.random.randint(k_from, (N_GRAPHS, EDGES_PER_GRAPH), 0, NODES_PER_GRAPH)
    local_to = jax.random.randint(k_to, (N_GRAPHS, EDGES_PER_GRAPH), 0, NODES_PER_GRAPH)
    offsets = (jnp.arange(N_GRAPHS) * NODES_PER_GRAPH)[:, None]
    from_idx = (local_from + offsets).reshape(-1).astype(jnp.int32)
    to_idx = (local_to + offsets).reshape(-1).astype(jnp.int32)
    graph_idx = jnp.repeat(jnp.arange(N_GRAPHS), NODES_PER_GRAPH).astype(jnp.int32)

    params = init_params(k_param, IN_NODE, IN_EDGE, D, DE, H_MSG, M, H_UPD, GD, GOUT)

    scores = gmn_embed_forward(node_features, edge_features, from_idx, to_idx,
                               graph_idx, N_GRAPHS, params, N_PROP_LAYERS)
    scores = jax.block_until_ready(scores)

    scores_ref = reference_forward(node_features, edge_features, from_idx, to_idx,
                                   graph_idx, N_GRAPHS, params, N_PROP_LAYERS)
    scores_ref = jax.block_until_ready(scores_ref)

    assert scores.shape == (B,)
    # bf16 MXU operands with f32 accumulation in-kernel vs a Precision.HIGHEST f32
    # reference across 3 residual prop layers -> loosened tolerance.
    assert jnp.allclose(scores, scores_ref, rtol=5e-2, atol=1e-1), (scores, scores_ref)
    print("KERNEL_OK")
</pallas_src>

<mosaic_0001>
module attributes {stable_mosaic.version = 11 : i64} {
  func.func @gmn_block_kernel(%arg0: i32, %arg1: memref<32x8xbf16, #tpu.memory_space<vmem>>, %arg2: memref<64x4xbf16, #tpu.memory_space<vmem>>, %arg3: memref<64x1xi32, #tpu.memory_space<vmem>>, %arg4: memref<64x1xi32, #tpu.memory_space<vmem>>, %arg5: memref<2x32xbf16, #tpu.memory_space<vmem>>, %arg6: memref<8x32xbf16, #tpu.memory_space<vmem>>, %arg7: memref<1x32xf32, #tpu.memory_space<vmem>>, %arg8: memref<4x16xbf16, #tpu.memory_space<vmem>>, %arg9: memref<1x16xf32, #tpu.memory_space<vmem>>, %arg10: memref<32x128xbf16, #tpu.memory_space<vmem>>, %arg11: memref<32x128xbf16, #tpu.memory_space<vmem>>, %arg12: memref<16x128xbf16, #tpu.memory_space<vmem>>, %arg13: memref<1x128xf32, #tpu.memory_space<vmem>>, %arg14: memref<128x128xbf16, #tpu.memory_space<vmem>>, %arg15: memref<1x128xf32, #tpu.memory_space<vmem>>, %arg16: memref<64x64xbf16, #tpu.memory_space<vmem>>, %arg17: memref<32x64xbf16, #tpu.memory_space<vmem>>, %arg18: memref<1x64xf32, #tpu.memory_space<vmem>>, %arg19: memref<64x32xbf16, #tpu.memory_space<vmem>>, %arg20: memref<1x32xf32, #tpu.memory_space<vmem>>, %arg21: memref<32x128xbf16, #tpu.memory_space<vmem>>, %arg22: memref<1x128xf32, #tpu.memory_space<vmem>>, %arg23: memref<64x64xbf16, #tpu.memory_space<vmem>>, %arg24: memref<1x1x2xf32, #tpu.memory_space<vmem>>) attributes {dimension_semantics = [#tpu.dimension_semantics<parallel>], iteration_bounds = array<i64: 2>, scalar_prefetch = 0 : i64, scratch_operands = 0 : i64, tpu.core_type = #tpu.core_type<tc>, window_params = [{transform_indices = @transform_0, window_bounds = array<i64: 32, 8>}, {transform_indices = @transform_1, window_bounds = array<i64: 64, 4>}, {transform_indices = @transform_2, window_bounds = array<i64: 64, 1>}, {transform_indices = @transform_3, window_bounds = array<i64: 64, 1>}, {pipeline_mode = #tpu.pipeline_mode<synchronous>, transform_indices = @transform_4, window_bounds = array<i64: 2, 32>}, {pipeline_mode = #tpu.pipeline_mode<synchronous>, transform_indices = @transform_5, window_bounds = array<i64: 8, 32>}, {pipeline_mode = #tpu.pipeline_mode<synchronous>, transform_indices = @transform_6, window_bounds = array<i64: 1, 32>}, {pipeline_mode = #tpu.pipeline_mode<synchronous>, transform_indices = @transform_7, window_bounds = array<i64: 4, 16>}, {pipeline_mode = #tpu.pipeline_mode<synchronous>, transform_indices = @transform_8, window_bounds = array<i64: 1, 16>}, {pipeline_mode = #tpu.pipeline_mode<synchronous>, transform_indices = @transform_9, window_bounds = array<i64: 32, 128>}, {pipeline_mode = #tpu.pipeline_mode<synchronous>, transform_indices = @transform_10, window_bounds = array<i64: 32, 128>}, {pipeline_mode = #tpu.pipeline_mode<synchronous>, transform_indices = @transform_11, window_bounds = array<i64: 16, 128>}, {pipeline_mode = #tpu.pipeline_mode<synchronous>, transform_indices = @transform_12, window_bounds = array<i64: 1, 128>}, {pipeline_mode = #tpu.pipeline_mode<synchronous>, transform_indices = @transform_13, window_bounds = array<i64: 128, 128>}, {pipeline_mode = #tpu.pipeline_mode<synchronous>, transform_indices = @transform_14, window_bounds = array<i64: 1, 128>}, {pipeline_mode = #tpu.pipeline_mode<synchronous>, transform_indices = @transform_15, window_bounds = array<i64: 64, 64>}, {pipeline_mode = #tpu.pipeline_mode<synchronous>, transform_indices = @transform_16, window_bounds = array<i64: 32, 64>}, {pipeline_mode = #tpu.pipeline_mode<synchronous>, transform_indices = @transform_17, window_bounds = array<i64: 1, 64>}, {pipeline_mode = #tpu.pipeline_mode<synchronous>, transform_indices = @transform_18, window_bounds = array<i64: 64, 32>}, {pipeline_mode = #tpu.pipeline_mode<synchronous>, transform_indices = @transform_19, window_bounds = array<i64: 1, 32>}, {pipeline_mode = #tpu.pipeline_mode<synchronous>, transform_indices = @transform_20, window_bounds = array<i64: 32, 128>}, {pipeline_mode = #tpu.pipeline_mode<synchronous>, transform_indices = @transform_21, window_bounds = array<i64: 1, 128>}, {pipeline_mode = #tpu.pipeline_mode<synchronous>, transform_indices = @transform_22, window_bounds = array<i64: 64, 64>}, {transform_indices = @transform_23, window_bounds = array<i64: 1, 1, 2>}]} {
    %0 = tpu.iota {dimensions = array<i32: 1>} : vector<64x32xi32>
    %c0 = arith.constant 0 : index
    %c0_0 = arith.constant 0 : index
    %1 = vector.load %arg3[%c0, %c0_0] : memref<64x1xi32, #tpu.memory_space<vmem>>, vector<64x1xi32>
    %2 = vector.broadcast %1 : vector<64x1xi32> to vector<64x32xi32>
    %3 = arith.cmpi eq, %0, %2 : vector<64x32xi32>
    %4 = arith.extui %3 : vector<64x32xi1> to vector<64x32xi32>
    %5 = arith.sitofp %4 : vector<64x32xi32> to vector<64x32xf32>
    %6 = arith.truncf %5 : vector<64x32xf32> to vector<64x32xbf16>
    %c0_1 = arith.constant 0 : index
    %c0_2 = arith.constant 0 : index
    %7 = vector.load %arg4[%c0_1, %c0_2] : memref<64x1xi32, #tpu.memory_space<vmem>>, vector<64x1xi32>
    %8 = vector.broadcast %7 : vector<64x1xi32> to vector<64x32xi32>
    %9 = arith.cmpi eq, %0, %8 : vector<64x32xi32>
    %10 = arith.extui %9 : vector<64x32xi1> to vector<64x32xi32>
    %11 = arith.sitofp %10 : vector<64x32xi32> to vector<64x32xf32>
    %12 = arith.truncf %11 : vector<64x32xf32> to vector<64x32xbf16>
    %c0_3 = arith.constant 0 : index
    %c0_4 = arith.constant 0 : index
    %13 = vector.load %arg1[%c0_3, %c0_4] : memref<32x8xbf16, #tpu.memory_space<vmem>>, vector<32x8xbf16>
    %c0_5 = arith.constant 0 : index
    %c0_6 = arith.constant 0 : index
    %14 = vector.load %arg6[%c0_5, %c0_6] : memref<8x32xbf16, #tpu.memory_space<vmem>>, vector<8x32xbf16>
    %cst = arith.constant dense<0.000000e+00> : vector<32x32xf32>
    %15 = tpu.matmul %13, %14, %cst {dimension_numbers = #tpu.dot_dimension_numbers<[1], [0], [0], [1], [0, 0, 1, 1], [], []>} : vector<32x8xbf16>, vector<8x32xbf16>, vector<32x32xf32> -> vector<32x32xf32>
    %c0_7 = arith.constant 0 : index
    %c0_8 = arith.constant 0 : index
    %16 = vector.load %arg7[%c0_7, %c0_8] : memref<1x32xf32, #tpu.memory_space<vmem>>, vector<1x32xf32>
    %17 = vector.broadcast %16 : vector<1x32xf32> to vector<32x32xf32>
    %18 = arith.addf %15, %17 : vector<32x32xf32>
    %c0_9 = arith.constant 0 : index
    %c0_10 = arith.constant 0 : index
    %19 = vector.load %arg2[%c0_9, %c0_10] : memref<64x4xbf16, #tpu.memory_space<vmem>>, vector<64x4xbf16>
    %c0_11 = arith.constant 0 : index
    %c0_12 = arith.constant 0 : index
    %20 = vector.load %arg8[%c0_11, %c0_12] : memref<4x16xbf16, #tpu.memory_space<vmem>>, vector<4x16xbf16>
    %cst_13 = arith.constant dense<0.000000e+00> : vector<64x16xf32>
    %21 = tpu.matmul %19, %20, %cst_13 {dimension_numbers = #tpu.dot_dimension_numbers<[1], [0], [0], [1], [0, 0, 1, 1], [], []>} : vector<64x4xbf16>, vector<4x16xbf16>, vector<64x16xf32> -> vector<64x16xf32>
    %c0_14 = arith.constant 0 : index
    %c0_15 = arith.constant 0 : index
    %22 = vector.load %arg9[%c0_14, %c0_15] : memref<1x16xf32, #tpu.memory_space<vmem>>, vector<1x16xf32>
    %23 = vector.broadcast %22 : vector<1x16xf32> to vector<64x16xf32>
    %24 = arith.addf %21, %23 : vector<64x16xf32>
    %25 = arith.truncf %24 : vector<64x16xf32> to vector<64x16xbf16>
    %c0_16 = arith.constant 0 : index
    %c0_17 = arith.constant 0 : index
    %26 = vector.load %arg12[%c0_16, %c0_17] : memref<16x128xbf16, #tpu.memory_space<vmem>>, vector<16x128xbf16>
    %cst_18 = arith.constant dense<0.000000e+00> : vector<64x128xf32>
    %27 = tpu.matmul %25, %26, %cst_18 {dimension_numbers = #tpu.dot_dimension_numbers<[1], [0], [0], [1], [0, 0, 1, 1], [], []>} : vector<64x16xbf16>, vector<16x128xbf16>, vector<64x128xf32> -> vector<64x128xf32>
    %c0_19 = arith.constant 0 : index
    %c0_20 = arith.constant 0 : index
    %28 = vector.load %arg13[%c0_19, %c0_20] : memref<1x128xf32, #tpu.memory_space<vmem>>, vector<1x128xf32>
    %29 = vector.broadcast %28 : vector<1x128xf32> to vector<64x128xf32>
    %30 = arith.addf %27, %29 : vector<64x128xf32>
    %c0_21 = arith.constant 0 : index
    %c0_22 = arith.constant 0 : index
    %31 = vector.load %arg10[%c0_21, %c0_22] : memref<32x128xbf16, #tpu.memory_space<vmem>>, vector<32x128xbf16>
    %c0_23 = arith.constant 0 : index
    %c0_24 = arith.constant 0 : index
    %32 = vector.load %arg11[%c0_23, %c0_24] : memref<32x128xbf16, #tpu.memory_space<vmem>>, vector<32x128xbf16>
    %c0_25 = arith.constant 0 : index
    %c0_26 = arith.constant 0 : index
    %33 = vector.load %arg14[%c0_25, %c0_26] : memref<128x128xbf16, #tpu.memory_space<vmem>>, vector<128x128xbf16>
    %c0_27 = arith.constant 0 : index
    %c0_28 = arith.constant 0 : index
    %34 = vector.load %arg15[%c0_27, %c0_28] : memref<1x128xf32, #tpu.memory_space<vmem>>, vector<1x128xf32>
    %c0_29 = arith.constant 0 : index
    %c0_30 = arith.constant 0 : index
    %35 = vector.load %arg16[%c0_29, %c0_30] : memref<64x64xbf16, #tpu.memory_space<vmem>>, vector<64x64xbf16>
    %c0_31 = arith.constant 0 : index
    %c0_32 = arith.constant 0 : index
    %36 = vector.load %arg17[%c0_31, %c0_32] : memref<32x64xbf16, #tpu.memory_space<vmem>>, vector<32x64xbf16>
    %c0_33 = arith.constant 0 : index
    %c0_34 = arith.constant 0 : index
    %37 = vector.load %arg18[%c0_33, %c0_34] : memref<1x64xf32, #tpu.memory_space<vmem>>, vector<1x64xf32>
    %c0_35 = arith.constant 0 : index
    %c0_36 = arith.constant 0 : index
    %38 = vector.load %arg19[%c0_35, %c0_36] : memref<64x32xbf16, #tpu.memory_space<vmem>>, vector<64x32xbf16>
    %c0_37 = arith.constant 0 : index
    %c0_38 = arith.constant 0 : index
    %39 = vector.load %arg20[%c0_37, %c0_38] : memref<1x32xf32, #tpu.memory_space<vmem>>, vector<1x32xf32>
    %40 = arith.truncf %18 : vector<32x32xf32> to vector<32x32xbf16>
    %cst_39 = arith.constant dense<0.000000e+00> : vector<64x32xf32>
    %41 = tpu.matmul %6, %40, %cst_39 {dimension_numbers = #tpu.dot_dimension_numbers<[1], [0], [0], [1], [0, 0, 1, 1], [], []>} : vector<64x32xbf16>, vector<32x32xbf16>, vector<64x32xf32> -> vector<64x32xf32>
    %cst_40 = arith.constant dense<0.000000e+00> : vector<64x32xf32>
    %42 = tpu.matmul %12, %40, %cst_40 {dimension_numbers = #tpu.dot_dimension_numbers<[1], [0], [0], [1], [0, 0, 1, 1], [], []>} : vector<64x32xbf16>, vector<32x32xbf16>, vector<64x32xf32> -> vector<64x32xf32>
    %43 = arith.truncf %41 : vector<64x32xf32> to vector<64x32xbf16>
    %cst_41 = arith.constant dense<0.000000e+00> : vector<64x128xf32>
    %44 = tpu.matmul %43, %31, %cst_41 {dimension_numbers = #tpu.dot_dimension_numbers<[1], [0], [0], [1], [0, 0, 1, 1], [], []>} : vector<64x32xbf16>, vector<32x128xbf16>, vector<64x128xf32> -> vector<64x128xf32>
    %45 = arith.truncf %42 : vector<64x32xf32> to vector<64x32xbf16>
    %cst_42 = arith.constant dense<0.000000e+00> : vector<64x128xf32>
    %46 = tpu.matmul %45, %32, %cst_42 {dimension_numbers = #tpu.dot_dimension_numbers<[1], [0], [0], [1], [0, 0, 1, 1], [], []>} : vector<64x32xbf16>, vector<32x128xbf16>, vector<64x128xf32> -> vector<64x128xf32>
    %47 = arith.addf %44, %46 : vector<64x128xf32>
    %48 = arith.addf %47, %30 : vector<64x128xf32>
    %cst_43 = arith.constant 0.000000e+00 : f32
    %49 = vector.broadcast %cst_43 : f32 to vector<64x128xf32>
    %50 = arith.maximumf %48, %49 : vector<64x128xf32>
    %51 = arith.truncf %50 : vector<64x128xf32> to vector<64x128xbf16>
    %cst_44 = arith.constant dense<0.000000e+00> : vector<64x128xf32>
    %52 = tpu.matmul %51, %33, %cst_44 {dimension_numbers = #tpu.dot_dimension_numbers<[1], [0], [0], [1], [0, 0, 1, 1], [], []>} : vector<64x128xbf16>, vector<128x128xbf16>, vector<64x128xf32> -> vector<64x128xf32>
    %53 = vector.broadcast %34 : vector<1x128xf32> to vector<64x128xf32>
    %54 = arith.addf %52, %53 : vector<64x128xf32>
    %55 = vector.extract_strided_slice %54 {offsets = [0, 0], sizes = [64, 64], strides = [1, 1]} : vector<64x128xf32> to vector<64x64xf32>
    %56 = arith.truncf %55 : vector<64x64xf32> to vector<64x64xbf16>
    %57 = vector.extract_strided_slice %54 {offsets = [0, 64], sizes = [64, 64], strides = [1, 1]} : vector<64x128xf32> to vector<64x64xf32>
    %58 = arith.truncf %57 : vector<64x64xf32> to vector<64x64xbf16>
    %cst_45 = arith.constant dense<0.000000e+00> : vector<32x64xf32>
    %59 = tpu.matmul %12, %56, %cst_45 {dimension_numbers = #tpu.dot_dimension_numbers<[0], [0], [1], [1], [0, 1, 1, 1], [], []>} : vector<64x32xbf16>, vector<64x64xbf16>, vector<32x64xf32> -> vector<32x64xf32>
    %cst_46 = arith.constant dense<0.000000e+00> : vector<32x64xf32>
    %60 = tpu.matmul %6, %58, %cst_46 {dimension_numbers = #tpu.dot_dimension_numbers<[0], [0], [1], [1], [0, 1, 1, 1], [], []>} : vector<64x32xbf16>, vector<64x64xbf16>, vector<32x64xf32> -> vector<32x64xf32>
    %61 = arith.addf %59, %60 : vector<32x64xf32>
    %62 = arith.truncf %61 : vector<32x64xf32> to vector<32x64xbf16>
    %cst_47 = arith.constant dense<0.000000e+00> : vector<32x64xf32>
    %63 = tpu.matmul %62, %35, %cst_47 {dimension_numbers = #tpu.dot_dimension_numbers<[1], [0], [0], [1], [0, 0, 1, 1], [], []>} : vector<32x64xbf16>, vector<64x64xbf16>, vector<32x64xf32> -> vector<32x64xf32>
    %cst_48 = arith.constant dense<0.000000e+00> : vector<32x64xf32>
    %64 = tpu.matmul %40, %36, %cst_48 {dimension_numbers = #tpu.dot_dimension_numbers<[1], [0], [0], [1], [0, 0, 1, 1], [], []>} : vector<32x32xbf16>, vector<32x64xbf16>, vector<32x64xf32> -> vector<32x64xf32>
    %65 = arith.addf %63, %64 : vector<32x64xf32>
    %66 = vector.broadcast %37 : vector<1x64xf32> to vector<32x64xf32>
    %67 = arith.addf %65, %66 : vector<32x64xf32>
    %cst_49 = arith.constant 0.000000e+00 : f32
    %68 = vector.broadcast %cst_49 : f32 to vector<32x64xf32>
    %69 = arith.maximumf %67, %68 : vector<32x64xf32>
    %70 = arith.truncf %69 : vector<32x64xf32> to vector<32x64xbf16>
    %cst_50 = arith.constant dense<0.000000e+00> : vector<32x32xf32>
    %71 = tpu.matmul %70, %38, %cst_50 {dimension_numbers = #tpu.dot_dimension_numbers<[1], [0], [0], [1], [0, 0, 1, 1], [], []>} : vector<32x64xbf16>, vector<64x32xbf16>, vector<32x32xf32> -> vector<32x32xf32>
    %72 = arith.addf %18, %71 : vector<32x32xf32>
    %73 = vector.broadcast %39 : vector<1x32xf32> to vector<32x32xf32>
    %74 = arith.addf %72, %73 : vector<32x32xf32>
    %75 = arith.truncf %74 : vector<32x32xf32> to vector<32x32xbf16>
    %cst_51 = arith.constant dense<0.000000e+00> : vector<64x32xf32>
    %76 = tpu.matmul %6, %75, %cst_51 {dimension_numbers = #tpu.dot_dimension_numbers<[1], [0], [0], [1], [0, 0, 1, 1], [], []>} : vector<64x32xbf16>, vector<32x32xbf16>, vector<64x32xf32> -> vector<64x32xf32>
    %cst_52 = arith.constant dense<0.000000e+00> : vector<64x32xf32>
    %77 = tpu.matmul %12, %75, %cst_52 {dimension_numbers = #tpu.dot_dimension_numbers<[1], [0], [0], [1], [0, 0, 1, 1], [], []>} : vector<64x32xbf16>, vector<32x32xbf16>, vector<64x32xf32> -> vector<64x32xf32>
    %78 = arith.truncf %76 : vector<64x32xf32> to vector<64x32xbf16>
    %cst_53 = arith.constant dense<0.000000e+00> : vector<64x128xf32>
    %79 = tpu.matmul %78, %31, %cst_53 {dimension_numbers = #tpu.dot_dimension_numbers<[1], [0], [0], [1], [0, 0, 1, 1], [], []>} : vector<64x32xbf16>, vector<32x128xbf16>, vector<64x128xf32> -> vector<64x128xf32>
    %80 = arith.truncf %77 : vector<64x32xf32> to vector<64x32xbf16>
    %cst_54 = arith.constant dense<0.000000e+00> : vector<64x128xf32>
    %81 = tpu.matmul %80, %32, %cst_54 {dimension_numbers = #tpu.dot_dimension_numbers<[1], [0], [0], [1], [0, 0, 1, 1], [], []>} : vector<64x32xbf16>, vector<32x128xbf16>, vector<64x128xf32> -> vector<64x128xf32>
    %82 = arith.addf %79, %81 : vector<64x128xf32>
    %83 = arith.addf %82, %30 : vector<64x128xf32>
    %cst_55 = arith.constant 0.000000e+00 : f32
    %84 = vector.broadcast %cst_55 : f32 to vector<64x128xf32>
    %85 = arith.maximumf %83, %84 : vector<64x128xf32>
    %86 = arith.truncf %85 : vector<64x128xf32> to vector<64x128xbf16>
    %cst_56 = arith.constant dense<0.000000e+00> : vector<64x128xf32>
    %87 = tpu.matmul %86, %33, %cst_56 {dimension_numbers = #tpu.dot_dimension_numbers<[1], [0], [0], [1], [0, 0, 1, 1], [], []>} : vector<64x128xbf16>, vector<128x128xbf16>, vector<64x128xf32> -> vector<64x128xf32>
    %88 = vector.broadcast %34 : vector<1x128xf32> to vector<64x128xf32>
    %89 = arith.addf %87, %88 : vector<64x128xf32>
    %90 = vector.extract_strided_slice %89 {offsets = [0, 0], sizes = [64, 64], strides = [1, 1]} : vector<64x128xf32> to vector<64x64xf32>
    %91 = arith.truncf %90 : vector<64x64xf32> to vector<64x64xbf16>
    %92 = vector.extract_strided_slice %89 {offsets = [0, 64], sizes = [64, 64], strides = [1, 1]} : vector<64x128xf32> to vector<64x64xf32>
    %93 = arith.truncf %92 : vector<64x64xf32> to vector<64x64xbf16>
    %cst_57 = arith.constant dense<0.000000e+00> : vector<32x64xf32>
    %94 = tpu.matmul %12, %91, %cst_57 {dimension_numbers = #tpu.dot_dimension_numbers<[0], [0], [1], [1], [0, 1, 1, 1], [], []>} : vector<64x32xbf16>, vector<64x64xbf16>, vector<32x64xf32> -> vector<32x64xf32>
    %cst_58 = arith.constant dense<0.000000e+00> : vector<32x64xf32>
    %95 = tpu.matmul %6, %93, %cst_58 {dimension_numbers = #tpu.dot_dimension_numbers<[0], [0], [1], [1], [0, 1, 1, 1], [], []>} : vector<64x32xbf16>, vector<64x64xbf16>, vector<32x64xf32> -> vector<32x64xf32>
    %96 = arith.addf %94, %95 : vector<32x64xf32>
    %97 = arith.truncf %96 : vector<32x64xf32> to vector<32x64xbf16>
    %cst_59 = arith.constant dense<0.000000e+00> : vector<32x64xf32>
    %98 = tpu.matmul %97, %35, %cst_59 {dimension_numbers = #tpu.dot_dimension_numbers<[1], [0], [0], [1], [0, 0, 1, 1], [], []>} : vector<32x64xbf16>, vector<64x64xbf16>, vector<32x64xf32> -> vector<32x64xf32>
    %cst_60 = arith.constant dense<0.000000e+00> : vector<32x64xf32>
    %99 = tpu.matmul %75, %36, %cst_60 {dimension_numbers = #tpu.dot_dimension_numbers<[1], [0], [0], [1], [0, 0, 1, 1], [], []>} : vector<32x32xbf16>, vector<32x64xbf16>, vector<32x64xf32> -> vector<32x64xf32>
    %100 = arith.addf %98, %99 : vector<32x64xf32>
    %101 = vector.broadcast %37 : vector<1x64xf32> to vector<32x64xf32>
    %102 = arith.addf %100, %101 : vector<32x64xf32>
    %cst_61 = arith.constant 0.000000e+00 : f32
    %103 = vector.broadcast %cst_61 : f32 to vector<32x64xf32>
    %104 = arith.maximumf %102, %103 : vector<32x64xf32>
    %105 = arith.truncf %104 : vector<32x64xf32> to vector<32x64xbf16>
    %cst_62 = arith.constant dense<0.000000e+00> : vector<32x32xf32>
    %106 = tpu.matmul %105, %38, %cst_62 {dimension_numbers = #tpu.dot_dimension_numbers<[1], [0], [0], [1], [0, 0, 1, 1], [], []>} : vector<32x64xbf16>, vector<64x32xbf16>, vector<32x32xf32> -> vector<32x32xf32>
    %107 = arith.addf %74, %106 : vector<32x32xf32>
    %108 = vector.broadcast %39 : vector<1x32xf32> to vector<32x32xf32>
    %109 = arith.addf %107, %108 : vector<32x32xf32>
    %110 = arith.truncf %109 : vector<32x32xf32> to vector<32x32xbf16>
    %cst_63 = arith.constant dense<0.000000e+00> : vector<64x32xf32>
    %111 = tpu.matmul %6, %110, %cst_63 {dimension_numbers = #tpu.dot_dimension_numbers<[1], [0], [0], [1], [0, 0, 1, 1], [], []>} : vector<64x32xbf16>, vector<32x32xbf16>, vector<64x32xf32> -> vector<64x32xf32>
    %cst_64 = arith.constant dense<0.000000e+00> : vector<64x32xf32>
    %112 = tpu.matmul %12, %110, %cst_64 {dimension_numbers = #tpu.dot_dimension_numbers<[1], [0], [0], [1], [0, 0, 1, 1], [], []>} : vector<64x32xbf16>, vector<32x32xbf16>, vector<64x32xf32> -> vector<64x32xf32>
    %113 = arith.truncf %111 : vector<64x32xf32> to vector<64x32xbf16>
    %cst_65 = arith.constant dense<0.000000e+00> : vector<64x128xf32>
    %114 = tpu.matmul %113, %31, %cst_65 {dimension_numbers = #tpu.dot_dimension_numbers<[1], [0], [0], [1], [0, 0, 1, 1], [], []>} : vector<64x32xbf16>, vector<32x128xbf16>, vector<64x128xf32> -> vector<64x128xf32>
    %115 = arith.truncf %112 : vector<64x32xf32> to vector<64x32xbf16>
    %cst_66 = arith.constant dense<0.000000e+00> : vector<64x128xf32>
    %116 = tpu.matmul %115, %32, %cst_66 {dimension_numbers = #tpu.dot_dimension_numbers<[1], [0], [0], [1], [0, 0, 1, 1], [], []>} : vector<64x32xbf16>, vector<32x128xbf16>, vector<64x128xf32> -> vector<64x128xf32>
    %117 = arith.addf %114, %116 : vector<64x128xf32>
    %118 = arith.addf %117, %30 : vector<64x128xf32>
    %cst_67 = arith.constant 0.000000e+00 : f32
    %119 = vector.broadcast %cst_67 : f32 to vector<64x128xf32>
    %120 = arith.maximumf %118, %119 : vector<64x128xf32>
    %121 = arith.truncf %120 : vector<64x128xf32> to vector<64x128xbf16>
    %cst_68 = arith.constant dense<0.000000e+00> : vector<64x128xf32>
    %122 = tpu.matmul %121, %33, %cst_68 {dimension_numbers = #tpu.dot_dimension_numbers<[1], [0], [0], [1], [0, 0, 1, 1], [], []>} : vector<64x128xbf16>, vector<128x128xbf16>, vector<64x128xf32> -> vector<64x128xf32>
    %123 = vector.broadcast %34 : vector<1x128xf32> to vector<64x128xf32>
    %124 = arith.addf %122, %123 : vector<64x128xf32>
    %125 = vector.extract_strided_slice %124 {offsets = [0, 0], sizes = [64, 64], strides = [1, 1]} : vector<64x128xf32> to vector<64x64xf32>
    %126 = arith.truncf %125 : vector<64x64xf32> to vector<64x64xbf16>
    %127 = vector.extract_strided_slice %124 {offsets = [0, 64], sizes = [64, 64], strides = [1, 1]} : vector<64x128xf32> to vector<64x64xf32>
    %128 = arith.truncf %127 : vector<64x64xf32> to vector<64x64xbf16>
    %cst_69 = arith.constant dense<0.000000e+00> : vector<32x64xf32>
    %129 = tpu.matmul %12, %126, %cst_69 {dimension_numbers = #tpu.dot_dimension_numbers<[0], [0], [1], [1], [0, 1, 1, 1], [], []>} : vector<64x32xbf16>, vector<64x64xbf16>, vector<32x64xf32> -> vector<32x64xf32>
    %cst_70 = arith.constant dense<0.000000e+00> : vector<32x64xf32>
    %130 = tpu.matmul %6, %128, %cst_70 {dimension_numbers = #tpu.dot_dimension_numbers<[0], [0], [1], [1], [0, 1, 1, 1], [], []>} : vector<64x32xbf16>, vector<64x64xbf16>, vector<32x64xf32> -> vector<32x64xf32>
    %131 = arith.addf %129, %130 : vector<32x64xf32>
    %132 = arith.truncf %131 : vector<32x64xf32> to vector<32x64xbf16>
    %cst_71 = arith.constant dense<0.000000e+00> : vector<32x64xf32>
    %133 = tpu.matmul %132, %35, %cst_71 {dimension_numbers = #tpu.dot_dimension_numbers<[1], [0], [0], [1], [0, 0, 1, 1], [], []>} : vector<32x64xbf16>, vector<64x64xbf16>, vector<32x64xf32> -> vector<32x64xf32>
    %cst_72 = arith.constant dense<0.000000e+00> : vector<32x64xf32>
    %134 = tpu.matmul %110, %36, %cst_72 {dimension_numbers = #tpu.dot_dimension_numbers<[1], [0], [0], [1], [0, 0, 1, 1], [], []>} : vector<32x32xbf16>, vector<32x64xbf16>, vector<32x64xf32> -> vector<32x64xf32>
    %135 = arith.addf %133, %134 : vector<32x64xf32>
    %136 = vector.broadcast %37 : vector<1x64xf32> to vector<32x64xf32>
    %137 = arith.addf %135, %136 : vector<32x64xf32>
    %cst_73 = arith.constant 0.000000e+00 : f32
    %138 = vector.broadcast %cst_73 : f32 to vector<32x64xf32>
    %139 = arith.maximumf %137, %138 : vector<32x64xf32>
    %140 = arith.truncf %139 : vector<32x64xf32> to vector<32x64xbf16>
    %cst_74 = arith.constant dense<0.000000e+00> : vector<32x32xf32>
    %141 = tpu.matmul %140, %38, %cst_74 {dimension_numbers = #tpu.dot_dimension_numbers<[1], [0], [0], [1], [0, 0, 1, 1], [], []>} : vector<32x64xbf16>, vector<64x32xbf16>, vector<32x32xf32> -> vector<32x32xf32>
    %142 = arith.addf %109, %141 : vector<32x32xf32>
    %143 = vector.broadcast %39 : vector<1x32xf32> to vector<32x32xf32>
    %144 = arith.addf %142, %143 : vector<32x32xf32>
    %145 = arith.truncf %144 : vector<32x32xf32> to vector<32x32xbf16>
    %c0_75 = arith.constant 0 : index
    %c0_76 = arith.constant 0 : index
    %146 = vector.load %arg21[%c0_75, %c0_76] : memref<32x128xbf16, #tpu.memory_space<vmem>>, vector<32x128xbf16>
    %cst_77 = arith.constant dense<0.000000e+00> : vector<32x128xf32>
    %147 = tpu.matmul %145, %146, %cst_77 {dimension_numbers = #tpu.dot_dimension_numbers<[1], [0], [0], [1], [0, 0, 1, 1], [], []>} : vector<32x32xbf16>, vector<32x128xbf16>, vector<32x128xf32> -> vector<32x128xf32>
    %c0_78 = arith.constant 0 : index
    %c0_79 = arith.constant 0 : index
    %148 = vector.load %arg22[%c0_78, %c0_79] : memref<1x128xf32, #tpu.memory_space<vmem>>, vector<1x128xf32>
    %149 = vector.broadcast %148 : vector<1x128xf32> to vector<32x128xf32>
    %150 = arith.addf %147, %149 : vector<32x128xf32>
    %151 = vector.extract_strided_slice %150 {offsets = [0, 0], sizes = [32, 64], strides = [1, 1]} : vector<32x128xf32> to vector<32x64xf32>
    %152 = arith.negf %151 : vector<32x64xf32>
    %153 = math.exp %152 : vector<32x64xf32>
    %cst_80 = arith.constant 1.000000e+00 : f32
    %154 = vector.broadcast %cst_80 : f32 to vector<32x64xf32>
    %155 = arith.addf %154, %153 : vector<32x64xf32>
    %156 = arith.divf %154, %155 : vector<32x64xf32>
    %157 = vector.extract_strided_slice %150 {offsets = [0, 64], sizes = [32, 64], strides = [1, 1]} : vector<32x128xf32> to vector<32x64xf32>
    %158 = arith.mulf %156, %157 : vector<32x64xf32>
    %c0_81 = arith.constant 0 : index
    %c0_82 = arith.constant 0 : index
    %159 = vector.load %arg5[%c0_81, %c0_82] : memref<2x32xbf16, #tpu.memory_space<vmem>>, vector<2x32xbf16>
    %160 = arith.truncf %158 : vector<32x64xf32> to vector<32x64xbf16>
    %cst_83 = arith.constant dense<0.000000e+00> : vector<2x64xf32>
    %161 = tpu.matmul %159, %160, %cst_83 {dimension_numbers = #tpu.dot_dimension_numbers<[1], [0], [0], [1], [0, 0, 1, 1], [], []>} : vector<2x32xbf16>, vector<32x64xbf16>, vector<2x64xf32> -> vector<2x64xf32>
    %162 = arith.truncf %161 : vector<2x64xf32> to vector<2x64xbf16>
    %c0_84 = arith.constant 0 : index
    %c0_85 = arith.constant 0 : index
    %163 = vector.load %arg23[%c0_84, %c0_85] : memref<64x64xbf16, #tpu.memory_space<vmem>>, vector<64x64xbf16>
    %cst_86 = arith.constant dense<0.000000e+00> : vector<2x64xf32>
    %164 = tpu.matmul %162, %163, %cst_86 {dimension_numbers = #tpu.dot_dimension_numbers<[1], [0], [0], [1], [0, 0, 1, 1], [], []>} : vector<2x64xbf16>, vector<64x64xbf16>, vector<2x64xf32> -> vector<2x64xf32>
    %165 = arith.mulf %164, %164 : vector<2x64xf32>
    %cst_87 = arith.constant dense<0.000000e+00> : vector<2xf32>
    %166 = vector.multi_reduction <add>, %165, %cst_87 [1] : vector<2x64xf32> to vector<2xf32>
    %cst_88 = arith.constant 0.000000e+00 : f32
    %167 = vector.broadcast %cst_88 : f32 to vector<2xf32>
    %168 = arith.subf %167, %166 : vector<2xf32>
    %169 = vector.shape_cast %168 : vector<2xf32> to vector<1x1x2xf32>
    %c0_89 = arith.constant 0 : index
    %c0_90 = arith.constant 0 : index
    %c0_91 = arith.constant 0 : index
    %170 = vector.load %arg24[%c0_89, %c0_90, %c0_91] : memref<1x1x2xf32, #tpu.memory_space<vmem>>, vector<1x1x2xf32>
    tpu.vector_store %arg24[%c0_89, %c0_90, %c0_91], %169 {strides = array<i32>} : memref<1x1x2xf32, #tpu.memory_space<vmem>>, vector<1x1x2xf32>,
    return
  }
  func.func @transform_0(%arg0: i32) -> (i32, i32) {
    %c0_i32 = arith.constant 0 : i32
    %c0_i32_0 = arith.constant 0 : i32
    return %arg0, %c0_i32 : i32, i32
  }
  func.func @transform_1(%arg0: i32) -> (i32, i32) {
    %c0_i32 = arith.constant 0 : i32
    %c0_i32_0 = arith.constant 0 : i32
    return %arg0, %c0_i32 : i32, i32
  }
  func.func @transform_2(%arg0: i32) -> (i32, i32) {
    %c0_i32 = arith.constant 0 : i32
    %c0_i32_0 = arith.constant 0 : i32
    return %arg0, %c0_i32 : i32, i32
  }
  func.func @transform_3(%arg0: i32) -> (i32, i32) {
    %c0_i32 = arith.constant 0 : i32
    %c0_i32_0 = arith.constant 0 : i32
    return %arg0, %c0_i32 : i32, i32
  }
  func.func @transform_4(%arg0: i32) -> (i32, i32) {
    %c0_i32 = arith.constant 0 : i32
    %c0_i32_0 = arith.constant 0 : i32
    %c0_i32_1 = arith.constant 0 : i32
    return %c0_i32, %c0_i32_0 : i32, i32
  }
  func.func @transform_5(%arg0: i32) -> (i32, i32) {
    %c0_i32 = arith.constant 0 : i32
    %c0_i32_0 = arith.constant 0 : i32
    %c0_i32_1 = arith.constant 0 : i32
    return %c0_i32, %c0_i32_0 : i32, i32
  }
  func.func @transform_6(%arg0: i32) -> (i32, i32) {
    %c0_i32 = arith.constant 0 : i32
    %c0_i32_0 = arith.constant 0 : i32
    %c0_i32_1 = arith.constant 0 : i32
    return %c0_i32, %c0_i32_0 : i32, i32
  }
  func.func @transform_7(%arg0: i32) -> (i32, i32) {
    %c0_i32 = arith.constant 0 : i32
    %c0_i32_0 = arith.constant 0 : i32
    %c0_i32_1 = arith.constant 0 : i32
    return %c0_i32, %c0_i32_0 : i32, i32
  }
  func.func @transform_8(%arg0: i32) -> (i32, i32) {
    %c0_i32 = arith.constant 0 : i32
    %c0_i32_0 = arith.constant 0 : i32
    %c0_i32_1 = arith.constant 0 : i32
    return %c0_i32, %c0_i32_0 : i32, i32
  }
  func.func @transform_9(%arg0: i32) -> (i32, i32) {
    %c0_i32 = arith.constant 0 : i32
    %c0_i32_0 = arith.constant 0 : i32
    %c0_i32_1 = arith.constant 0 : i32
    return %c0_i32, %c0_i32_0 : i32, i32
  }
  func.func @transform_10(%arg0: i32) -> (i32, i32) {
    %c0_i32 = arith.constant 0 : i32
    %c0_i32_0 = arith.constant 0 : i32
    %c0_i32_1 = arith.constant 0 : i32
    return %c0_i32, %c0_i32_0 : i32, i32
  }
  func.func @transform_11(%arg0: i32) -> (i32, i32) {
    %c0_i32 = arith.constant 0 : i32
    %c0_i32_0 = arith.constant 0 : i32
    %c0_i32_1 = arith.constant 0 : i32
    return %c0_i32, %c0_i32_0 : i32, i32
  }
  func.func @transform_12(%arg0: i32) -> (i32, i32) {
    %c0_i32 = arith.constant 0 : i32
    %c0_i32_0 = arith.constant 0 : i32
    %c0_i32_1 = arith.constant 0 : i32
    return %c0_i32, %c0_i32_0 : i32, i32
  }
  func.func @transform_13(%arg0: i32) -> (i32, i32) {
    %c0_i32 = arith.constant 0 : i32
    %c0_i32_0 = arith.constant 0 : i32
    %c0_i32_1 = arith.constant 0 : i32
    return %c0_i32, %c0_i32_0 : i32, i32
  }
  func.func @transform_14(%arg0: i32) -> (i32, i32) {
    %c0_i32 = arith.constant 0 : i32
    %c0_i32_0 = arith.constant 0 : i32
    %c0_i32_1 = arith.constant 0 : i32
    return %c0_i32, %c0_i32_0 : i32, i32
  }
  func.func @transform_15(%arg0: i32) -> (i32, i32) {
    %c0_i32 = arith.constant 0 : i32
    %c0_i32_0 = arith.constant 0 : i32
    %c0_i32_1 = arith.constant 0 : i32
    return %c0_i32, %c0_i32_0 : i32, i32
  }
  func.func @transform_16(%arg0: i32) -> (i32, i32) {
    %c0_i32 = arith.constant 0 : i32
    %c0_i32_0 = arith.constant 0 : i32
    %c0_i32_1 = arith.constant 0 : i32
    return %c0_i32, %c0_i32_0 : i32, i32
  }
  func.func @transform_17(%arg0: i32) -> (i32, i32) {
    %c0_i32 = arith.constant 0 : i32
    %c0_i32_0 = arith.constant 0 : i32
    %c0_i32_1 = arith.constant 0 : i32
    return %c0_i32, %c0_i32_0 : i32, i32
  }
  func.func @transform_18(%arg0: i32) -> (i32, i32) {
    %c0_i32 = arith.constant 0 : i32
    %c0_i32_0 = arith.constant 0 : i32
    %c0_i32_1 = arith.constant 0 : i32
    return %c0_i32, %c0_i32_0 : i32, i32
  }
  func.func @transform_19(%arg0: i32) -> (i32, i32) {
    %c0_i32 = arith.constant 0 : i32
    %c0_i32_0 = arith.constant 0 : i32
    %c0_i32_1 = arith.constant 0 : i32
    return %c0_i32, %c0_i32_0 : i32, i32
  }
  func.func @transform_20(%arg0: i32) -> (i32, i32) {
    %c0_i32 = arith.constant 0 : i32
    %c0_i32_0 = arith.constant 0 : i32
    %c0_i32_1 = arith.constant 0 : i32
    return %c0_i32, %c0_i32_0 : i32, i32
  }
  func.func @transform_21(%arg0: i32) -> (i32, i32) {
    %c0_i32 = arith.constant 0 : i32
    %c0_i32_0 = arith.constant 0 : i32
    %c0_i32_1 = arith.constant 0 : i32
    return %c0_i32, %c0_i32_0 : i32, i32
  }
  func.func @transform_22(%arg0: i32) -> (i32, i32) {
    %c0_i32 = arith.constant 0 : i32
    %c0_i32_0 = arith.constant 0 : i32
    %c0_i32_1 = arith.constant 0 : i32
    return %c0_i32, %c0_i32_0 : i32, i32
  }
  func.func @transform_23(%arg0: i32) -> (i32, i32, i32) {
    %c0_i32 = arith.constant 0 : i32
    %c0_i32_0 = arith.constant 0 : i32
    %c0_i32_1 = arith.constant 0 : i32
    return %arg0, %c0_i32, %c0_i32_0 : i32, i32, i32
  }
}

</mosaic_0001>

<bundles_post_ra>
// kernel: tpu_custom_call.1
= control target key start
LH: loop header
LB: loop body
LE: loop exit
PB: predicated region body
PF: predicated region fallthrough
CT: control target
= control target key end

     0   :  { %s4011_s0 = inlined_call_operand.vmem [shape: bf16[64,8], index: 0, kind: input, shape index: {}]   ;;  %s4012_s1 = inlined_call_operand.vmem [shape: bf16[128,4], index: 1, kind: input, shape index: {}]   ;;  %s4013_s2 = inlined_call_operand.vmem [shape: s32[128,1], index: 2, kind: input, shape index: {}]   ;;  %s4014_s3 = inlined_call_operand.vmem [shape: s32[128,1], index: 3, kind: input, shape index: {}]   ;;  %s4015_s4 = inlined_call_operand.vmem [shape: bf16[2,32], index: 4, kind: input, shape index: {}]   ;;  %s4016_s5 = inlined_call_operand.vmem [shape: bf16[8,32], index: 5, kind: input, shape index: {}]   ;;  %s4017_s6 = inlined_call_operand.vmem [shape: f32[1,32], index: 6, kind: input, shape index: {}]   ;;  %s4018_s7 = inlined_call_operand.vmem [shape: bf16[4,16], index: 7, kind: input, shape index: {}]   ;;  %s4019_s8 = inlined_call_operand.vmem [shape: f32[1,16], index: 8, kind: input, shape index: {}]   ;;  %s4020_s9 = inlined_call_operand.vmem [shape: bf16[32,128], index: 9, kind: input, shape index: {}]   ;;  %s4021_s10 = inlined_call_operand.vmem [shape: bf16[32,128], index: 10, kind: input, shape index: {}]   ;;  %s4022_s11 = inlined_call_operand.vmem [shape: bf16[16,128], index: 11, kind: input, shape index: {}]   ;;  %s4023_s12 = inlined_call_operand.vmem [shape: f32[1,128], index: 12, kind: input, shape index: {}]   ;;  %s4024_s13 = inlined_call_operand.vmem [shape: bf16[128,128], index: 13, kind: input, shape index: {}]   ;;  %s4025_s14 = inlined_call_operand.vmem [shape: f32[1,128], index: 14, kind: input, shape index: {}]   ;;  %s4026_s15 = inlined_call_operand.vmem [shape: bf16[64,64], index: 15, kind: input, shape index: {}]   ;;  %s4027_s16 = inlined_call_operand.vmem [shape: bf16[32,64], index: 16, kind: input, shape index: {}]   ;;  %s4028_s17 = inlined_call_operand.vmem [shape: f32[1,64], index: 17, kind: input, shape index: {}]   ;;  %s4029_s18 = inlined_call_operand.vmem [shape: bf16[64,32], index: 18, kind: input, shape index: {}]   ;;  %s4030_s19 = inlined_call_operand.vmem [shape: f32[1,32], index: 19, kind: input, shape index: {}]   ;;  %s4031_s20 = inlined_call_operand.vmem [shape: bf16[32,128], index: 20, kind: input, shape index: {}]   ;;  %s4032_s21 = inlined_call_operand.vmem [shape: f32[1,128], index: 21, kind: input, shape index: {}]   ;;  %s4033_s22 = inlined_call_operand.vmem [shape: bf16[64,64], index: 22, kind: input, shape index: {}]   ;;  %s4034_s23 = inlined_call_operand.hbm [shape: f32[2,1,2], index: 23, kind: output, shape index: {}]  }
   0x1   :  { %4051 = sst [smem:[#allocation19_spill]] %s4011_s0 }
   0x2   :  { %4052 = sst [smem:[#allocation20_spill]] %s4012_s1 }
   0x3   :  { %4053 = sst [smem:[#allocation21_spill]] %s4013_s2 }
   0x4   :  { %4054 = sst [smem:[#allocation22_spill]] %s4014_s3 }
   0x5   :  { %4055 = sst [smem:[#allocation23_spill]] %s4015_s4 }
   0x6   :  { %4056 = sst [smem:[#allocation24_spill]] %s4016_s5 }
   0x7   :  { %4057 = sst [smem:[#allocation25_spill]] %s4017_s6 }
   0x8   :  { %4058 = sst [smem:[#allocation26_spill]] %s4018_s7 }
   0x9   :  { %4059 = sst [smem:[#allocation27_spill]] %s4034_s23 }
   0xa   :  { %28 = vsyncpa [#allocation3], 0 }
   0xb   :  { %30 = vsyncpa [#allocation3 + $0x1], 0  ;;  %s3281_s4 = smov 0   ;;  %s3283_s30 = smov 0  }
   0xc   :  { %s3285_s24 = smov 0   ;;  %s3287_s25 = smov 0  }
   0xd LB: > { %4060 = sst [smem:[#allocation5_spill]] %s3144_s4  ;;  %s3302_s5 = sadd.s32 4294967295, %s3156_s25   ;;  %s3156_s25 = sphi %s3287_s25, %s4098_s25   ;;  %s3152_s24 = sphi %s3285_s24, %s4101_s24   ;;  %s3148_s30 = sphi %s3283_s30, %s4100_s30   ;;  %s3144_s4 = sphi %s3281_s4, %s4099_s4  }
   0xe   : > { %4061 = sst [smem:[#allocation6_spill]] %s3148_s30  ;;  %s2725_s1 = sadd.s32 4294967294, %s3156_s25  }
   0xf   : > { %4062 = sst [smem:[#allocation7_spill]] %s3152_s24  ;;  %s3306_s26 = sadd.s32 1, %s3156_s25  }
  0x10   : > { %4063 = sst [smem:[#allocation8_spill]] %s3156_s25  ;;  %s546_s2 = sadd.s32 1, %s3152_s24 }
  0x11   : > { %4064 = sst [smem:[#allocation9_spill]] %s3302_s5  ;;  %s543_s6 = ssub.s32 %s3156_s25, %s3306_s26 }
  0x12   : > { %4065 = sst [smem:[#allocation10_spill]] %s3306_s26  ;;  %p556_p0 = scmp.ne.s32.totalorder %s3152_s24, %s3148_s30 }
  0x13   : > { %p544_p1 = scmp.eq.s32.totalorder %s543_s6, 0  ;;  %p557_p2 = scmp.eq.s32.totalorder %s3302_s5, 1 }
  0x14   : > { %p562_p3 = scmp.ne.s32.totalorder %s3148_s30, %s3144_s4  ;;  %p563_p4 = scmp.eq.s32.totalorder %s2725_s1, 1 }
  0x15   : > { %s3317_s27 = scalar_select %p544_p1, %s3152_s24, %s546_s2  }
  0x16   : > { %p3319_p5 = por %p557_p2, %p556_p0  ;;  %p3323_p6 = por %p563_p4, %p562_p3 }
  0x17   : > { %4066 = sst [smem:[#allocation11_spill]] %s3317_s27  ;;  %p2728_p7 = scmp.ge.s32.totalorder %s3156_s25, 1 }
  0x18   : > { %s4067_s7 = scalar_select %p3319_p5, 1, 0 }
  0x19   : > { %s4069_s28 = scalar_select %p3323_p6, 1, 0 }
  0x1a   : > { %4068 = sst [smem:[#allocation12_spill]] %s4067_s7  ;;  %p674_p8 = scmp.lt.s32.totalorder %s3156_s25, 3 }
  0x1b   : > { %4070 = sst [smem:[#allocation13_spill]] %s4069_s28 }
  0x1c   : > { %p675_p9 = pnand %p2728_p7, %p674_p8 }
  0x1e   : > { %678 = sbr.rel (%p675_p9) target bundleno = 4129 (0x1021), region = 112 }
  0x23   : > { %s4071_s0 = sld [smem:[#allocation24_spill]]  ;;  %vm925_vm0 = vcmask 1043456   ;;  %s2731_s1 = sshll.u32 %s3302_s5, 3  ;;  %v3158_v2 = vmov 0   ;;  %vm918_vm1 = vcmask 64512   ;;  %vm994_vm2 = vcmask 1041408  }
  0x24   : > { %s2729_s2 = sshll.u32 %s3302_s5, 2  ;;  %3068 = vset.pattern.permute.xlu0 %v3158_v2  ;;  %p759_p10 = scmp.lt.s32.totalorder %s2731_s1, 15  ;;  %3069 = vset.pattern.permute.xlu1 %v3158_v2  ;;  %vm981_vm3 = vcmask 31744   ;;  %v777_v32 = vlaneseq  ;;  %v3159_v42 = vmov 0.0   ;;  %vm1134_vm8 = vcmask 261120   ;;  %v2997_v63 = vld [vmem:[%s4022_s11] sm:$0xff] }
  0x25   : > { %p753_p11 = scmp.lt.s32.totalorder %s2729_s2, 7  ;;  %3070 = vset.pattern.permute.xlu2 %v3158_v2  ;;  %s4072_s29 = sld [smem:[#allocation21_spill]]  ;;  %1063 = vmatpush.bf16.msra.mxu2 %v2997_v63 }
  0x26   : > { %s4103_s1 = smov (!%p759_p10, %s2731_s1), 15  ;;  %s4073_s4 = sld [smem:[#allocation19_spill]]  ;;  %v3384_v34 = vand.u32 127, %v777_v32 }
  0x27   : > { %s4105_s2 = smov (!%p753_p11, %s2729_s2), 7  ;;  %s2734_s6 = sshll.u32 %s4103_s1, 3 }
  0x28   : > { %s4074_s5 = sld [smem:[#allocation22_spill]]  ;;  %s2732_s24 = sshll.u32 %s4103_s1, 2  ;;  %4078 = vst [vmem:[#allocation14_spill] sm:$0xff] %v3384_v34 }
  0x29   : > { %v903_v0 = vld [vmem:[%s4071_s0] sm:$0xf]  ;;  %s2730_s0 = sshll.u32 %s4105_s2, 2  ;;  %s4075_s23 = sld [smem:[#allocation20_spill]] }
  0x2a   : > { %v927_v1 = vsel %vm925_vm0, %v903_v0, 0  ;;  %s4076_s28 = sld [smem:[#allocation26_spill]] }
  0x2b   : > { %936 = vmatpush.bf16.msra.mxu0 %v927_v1  ;;  %s3337_s3 = scalar_lea.vmem %s4072_s29, %s2734_s6  ;;  %s4077_s2 = sld [smem:[#allocation25_spill]]  ;;  %v3072_v1 = vld [vmem:[%s4019_s8] ss:$0 sm:$0xff] }
  0x2c   : > { %v779_v3 = vld [vmem:[%s3337_s3] sm:$0xff]  ;;  %s756_s25 = scalar_lea.vmem %s4073_s4, %s2730_s0  ;;  %v781_v6 = vld [vmem:[%s3337_s3 + $0x10] sm:$0xff]  ;;  %v780_v7 = vld [vmem:[%s3337_s3 + $0x8] sm:$0xff]  ;;  %s3160_s0 = smov 64  }
  0x2d   : > { %788 = vperm.xlu0 %3068, %v779_v3   ;;  %v2991_v4 = vld [vmem:[%s756_s25] sm:$0xff]  ;;  %794 = vperm.xlu2 %3070, %v781_v6   ;;  %v782_v9 = vld [vmem:[%s3337_s3 + $0x18] sm:$0xff]  ;;  %v2992_v14 = vld [vmem:[%s756_s25 + $0x8] sm:$0xff]  ;;  %s4090_s26 = sld [smem:[#allocation6_spill]] }
  0x2e   : > { %s3346_s30 = scalar_lea.vmem %s4074_s5, %s2734_s6  ;;  %2761 = vmatmul.msk.bf16.vlgmr.msra.gmra.mxu0 %vm918_vm1, %v2991_v4  ;;  %v783_v16 = vld [vmem:[%s3337_s3 + $0x20] sm:$0xff]  ;;  %v784_v17 = vld [vmem:[%s3337_s3 + $0x28] sm:$0xff]  ;;  %v785_v21 = vld [vmem:[%s3337_s3 + $0x30] sm:$0xff]  ;;  %s4091_s27 = sld [smem:[#allocation9_spill]] }
  0x2f   : > { %v839_v5 = vld [vmem:[%s3346_s30] sm:$0xff]  ;;  %v840_v8 = vld [vmem:[%s3346_s30 + $0x8] sm:$0xff]  ;;  %s3356_s5 = scalar_lea.vmem %s4075_s23, %s2732_s24  ;;  %v841_v13 = vld [vmem:[%s3346_s30 + $0x10] sm:$0xff] }
  0x30   : > { %848 = vperm.xlu1 %3069, %v839_v5   ;;  %v956_v10 = vld [vmem:[%s4076_s28] sm:$0x3]  ;;  %v842_v15 = vld [vmem:[%s3346_s30 + $0x18] sm:$0xff]  ;;  %v844_v19 = vld [vmem:[%s3346_s30 + $0x28] sm:$0xff] }
  0x31   : > { %v996_v11 = vsel %vm994_vm2, %v956_v10, 0  ;;  %v2993_v12 = vld [vmem:[%s3356_s5] sm:$0xff]  ;;  %v2994_v20 = vld [vmem:[%s3356_s5 + $0x8] sm:$0xff]  ;;  %v786_v22 = vld [vmem:[%s3337_s3 + $0x38] sm:$0xff]  ;;  %s4089_s3 = sld [smem:[#allocation23_spill]] }
  0x32   : > { %1005 = vmatpush.bf16.msra.mxu1 %v996_v11  ;;  %v843_v18 = vld [vmem:[%s3346_s30 + $0x20] sm:$0xff]  ;;  %v845_v23 = vld [vmem:[%s3346_s30 + $0x30] sm:$0xff]  ;;  %v846_v24 = vld [vmem:[%s3346_s30 + $0x38] sm:$0xff] }
  0x33   : > { %v2995_v25 = vld [vmem:[%s3356_s5 + $0x10] sm:$0xff]  ;;  %v2996_v26 = vld [vmem:[%s3356_s5 + $0x18] sm:$0xff]  ;;  %v3071_v33 = vld [vmem:[%s4077_s2] ss:$0 sm:$0xff]  ;;  %s750_s25 = sand.u32 1, %s4090_s26  }
  0x34   : > { %s751_s29 = scalar_lea.vmem [#allocation2], %s750_s25  ;;  %s2622_s4 = scalar_lea.sflag [#allocation3], %s750_s25 }
  0x35   : > { %791 = vperm.xlu0 %3068, %v780_v7   ;;  %797 = vperm.xlu2 %3070, %v782_v9  }
  0x36   : > { %2779 = vmatmul.msk.bf16.vlgmr.msra.gmra.mxu1 %vm981_vm3, %v2993_v12 }
  0x38   : > { %851 = vperm.xlu1 %3069, %v840_v8  }
  0x3d   : > { %854 = vperm.xlu0 %3068, %v841_v13   ;;  %800 = vperm.xlu2 %3070, %v783_v16  }
  0x3e   : > { %2762 = vmatmul.msk.bf16.gmra.mxu0 %vm918_vm1, %v2992_v14  ;;  %vm1043_vm1 = vcmask 130048  }
  0x40   : > { %857 = vperm.xlu1 %3069, %v842_v15  }
  0x45   : > { %803 = vperm.xlu0 %3068, %v784_v17   ;;  %863 = vperm.xlu2 %3070, %v844_v19  }
  0x46   : > { %2780 = vmatmul.msk.bf16.gmra.mxu1 %vm981_vm3, %v2994_v20 }
  0x48   : > { %860 = vperm.xlu1 %3069, %v843_v18  }
  0x4d   : > { %806 = vperm.xlu0 %3068, %v785_v21   ;;  %866 = vperm.xlu2 %3070, %v845_v23  }
  0x50   : > { %809 = vperm.xlu1 %3069, %v786_v22  }
  0x55   : > { %869 = vperm.xlu0 %3068, %v846_v24  }
  0x56   : > { %2781 = vmatmul.msk.bf16.gmra.mxu1 %vm981_vm3, %v2995_v25 }
  0x66   : > { %2782 = vmatmul.msk.bf16.gmra.mxu1 %vm981_vm3, %v2996_v26 }
  0x87   : > { %v795_v44 = vpop.permute.xlu2 %794 }
  0x88   : > { %vm813_vm9 = vcmp.eq.s32.totalorder %v3384_v34, %v795_v44  ;;  %v3483_v44 = vld [vmem:[%s4021_s10 + $0x8] sm:$0xff] }
  0x89   : > { %v2739_v55 = vsel %vm813_vm9, 1.0, %v3159_v42  ;;  %1255 = vmatpush.bf16.msrb.mxu1 %v3483_v44 }
  0x8f   : > { %v798_v52 = vpop.permute.xlu2 %797 }
  0x90   : > { %vm814_vm10 = vcmp.eq.s32.totalorder %v3384_v34, %v798_v52 }
  0x91   : > { %v2740_v56 = vsel %vm814_vm10, 1.0, %v3159_v42 }
  0x92   : > { %v3430_v60 = vpack.c.bf16 %v2740_v56, %v2739_v55 }
  0x97   : > { %v801_v59 = vpop.permute.xlu2 %800 }
  0x98   : > { %vm815_vm13 = vcmp.eq.s32.totalorder %v3384_v34, %v801_v59 }
  0x99   : > { %v2741_v7 = vsel %vm815_vm13, 1.0, %v3159_v42 }
  0x9f   : > { %v789_v31 = vpop.permute.xlu0 %788  ;;  %v864_v3 = vpop.permute.xlu2 %863 }
  0xa0   : > { %vm811_vm6 = vcmp.eq.s32.totalorder %v3384_v34, %v789_v31  ;;  %vm876_vm0 = vcmp.eq.s32.totalorder %v3384_v34, %v864_v3  ;;  %v3511_v3 = vld [vmem:[%s4027_s16 + $0x8] sm:$0xff] }
  0xa1   : > { %v2737_v47 = vsel %vm811_vm6, 1.0, %v3159_v42  ;;  %v2750_v10 = vsel %vm876_vm0, 1.0, %v3159_v42  ;;  %vm1467_vm6 = vcmask 523264  }
  0xa2   : > { %v849_v29 = vpop.permute.xlu1 %848 }
  0xa3   : > { %vm871_vm4 = vcmp.eq.s32.totalorder %v3384_v34, %v849_v29 }
  0xa4   : > { %v2745_v43 = vsel %vm871_vm4, 1.0, %v3159_v42 }
  0xa7   : > { %v792_v39 = vpop.permute.xlu0 %791  ;;  %v867_v16 = vpop.permute.xlu2 %866 }
  0xa8   : > { %vm812_vm7 = vcmp.eq.s32.totalorder %v3384_v34, %v792_v39  ;;  %vm877_vm2 = vcmp.eq.s32.totalorder %v3384_v34, %v867_v16  ;;  %v3526_v16 = vld [vmem:[%s4024_s13 + $0x38] sm:$0xff] }
  0xa9   : > { %v2738_v48 = vsel %vm812_vm7, 1.0, %v3159_v42  ;;  %v2751_v22 = vsel %vm877_vm2, 1.0, %v3159_v42 }
  0xaa   : > { %v852_v36 = vpop.permute.xlu1 %851  ;;  %v3416_v51 = vpack.c.bf16 %v2738_v48, %v2737_v47  ;;  %v3494_v47 = vld [vmem:[%s4021_s10] sm:$0xff] }
  0xab   : > { %v938_v27 = vpop.f32.mrf.mxu0  ;;  %vm872_vm5 = vcmp.eq.s32.totalorder %v3384_v34, %v852_v36  ;;  %1256 = vmatpush.bf16.msrb.mxu1 %v3494_v47  ;;  %v3501_v48 = vld [vmem:[%s4020_s9] sm:$0xff] }
  0xac   : > { %v2746_v45 = vsel %vm872_vm5, 1.0, %v3159_v42  ;;  %v3402_v46 = vadd.f32 %v3071_v33, %v938_v27 }
  0xad   : > { %v3412_v50 = vpack.c.bf16 %v2746_v45, %v2745_v43  ;;  %v3489_v45 = vld [vmem:[%s4020_s9 + $0x8] sm:$0xff] }
  0xae   : > { %1308 = vmatpush.bf16.msrb.mxu2 %v3489_v45 }
  0xaf   : > { %v855_v53 = vpop.permute.xlu0 %854  ;;  %1560 = vmatpush.bf16.msra.mxu1 %v3511_v3 }
  0xb0   : > { %vm873_vm11 = vcmp.eq.s32.totalorder %v3384_v34, %v855_v53 }
  0xb1   : > { %v2747_v57 = vsel %vm873_vm11, 1.0, %v3159_v42 }
  0xb2   : > { %v858_v54 = vpop.permute.xlu1 %857  ;;  %1309 = vmatpush.bf16.msrb.mxu2 %v3501_v48 }
  0xb3   : > { %v940_v28 = vpop.f32.mrf.mxu0  ;;  %vm874_vm12 = vcmp.eq.s32.totalorder %v3384_v34, %v858_v54  ;;  %v1007_v62 = vpop.f32.mrf.mxu1 }
  0xb4   : > { %v3392_v40 = vadd.f32 %v3071_v33, %v940_v28  ;;  %v2748_v58 = vsel %vm874_vm12, 1.0, %v3159_v42  ;;  %v1008_v4 = vadd.f32 %v3072_v1, %v1007_v62 }
  0xb5   : > { %v3432_v61 = vpack.c.bf16 %v2748_v58, %v2747_v57 }
  0xb6   : > { %v3410_v49 = vpack.c.bf16 %v3392_v40, %v3402_v46 }
  0xb7   : > { %v804_v0 = vpop.permute.xlu0 %803 }
  0xb8   : > { %vm816_vm14 = vcmp.eq.s32.totalorder %v3384_v34, %v804_v0 }
  0xb9   : > { %v2742_v8 = vsel %vm816_vm14, 1.0, %v3159_v42 }
  0xba   : > { %v861_v2 = vpop.permute.xlu1 %860  ;;  %v3453_v13 = vpack.c.bf16 %v2742_v8, %v2741_v7 }
  0xbb   : > { %v943_v30 = vpop.f32.mrf.mxu0  ;;  %vm875_vm15 = vcmp.eq.s32.totalorder %v3384_v34, %v861_v2  ;;  %v1009_v5 = vpop.f32.mrf.mxu1 }
  0xbc   : > { %v3386_v37 = vadd.f32 %v3071_v33, %v943_v30  ;;  %v1010_v6 = vadd.f32 %v3072_v1, %v1009_v5  ;;  %v2749_v9 = vsel %vm875_vm15, 1.0, %v3159_v42  ;;  %4079 = vst [vmem:[#allocation15_spill] sm:$0xff] %v3453_v13 }
  0xbd   : > { %v3455_v14 = vpack.c.bf16 %v2750_v10, %v2749_v9 }
  0xbe   : > { %v1027_v12 = vpack.c.bf16 %v1010_v6, %v1008_v4  ;;  %v3517_v4 = vld [vmem:[%s4027_s16] sm:$0xff] }
  0xbf   : > { %v807_v11 = vpop.permute.xlu0 %806  ;;  %4080 = vst [vmem:[#allocation16_spill] sm:$0xff] %v3455_v14  ;;  %1561 = vmatpush.bf16.msra.mxu1 %v3517_v4 }
  0xc0   : > { %2787 = vmatmul.msk.bf16.vlgmr.msra.gmra.mxu2 %vm1043_vm1, %v1027_v12  ;;  %vm817_vm3 = vcmp.eq.s32.totalorder %v3384_v34, %v807_v11 }
  0xc1   : > { %v2743_v23 = vsel %vm817_vm3, 1.0, %v3159_v42 }
  0xc2   : > { %v810_v17 = vpop.permute.xlu1 %809 }
  0xc3   : > { %v945_v35 = vpop.f32.mrf.mxu0  ;;  %v1012_v15 = vpop.f32.mrf.mxu1  ;;  %vm818_vm4 = vcmp.eq.s32.totalorder %v3384_v34, %v810_v17 }
  0xc4   : > { %v3388_v38 = vadd.f32 %v3071_v33, %v945_v35  ;;  %v1013_v19 = vadd.f32 %v3072_v1, %v1012_v15  ;;  %v2744_v24 = vsel %vm818_vm4, 1.0, %v3159_v42 }
  0xc5   : > { %v3470_v27 = vpack.c.bf16 %v2744_v24, %v2743_v23  ;;  %v3537_v23 = vld [vmem:[%s4024_s13 + $0x30] sm:$0xff]  ;;  %v3543_v24 = vld [vmem:[%s4024_s13 + $0x28] sm:$0xff] }
  0xc6   : > { %v3396_v41 = vpack.c.bf16 %v3388_v38, %v3386_v37 }
  0xc7   : > { %v870_v18 = vpop.permute.xlu0 %869  ;;  %4081 = vst [vmem:[#allocation17_spill] sm:$0xff] %v3470_v27 }
  0xc8   : > { %1153 = vmatpush.bf16.msra.mxu3 %v3396_v41  ;;  %1194 = vmatpush.bf16.msrb.mxu0 %v3396_v41  ;;  %vm878_vm5 = vcmp.eq.s32.totalorder %v3384_v34, %v870_v18 }
  0xc9   : > { %v2752_v25 = vsel %vm878_vm5, 1.0, %v3159_v42 }
  0xca   : > { %v3472_v28 = vpack.c.bf16 %v2752_v25, %v2751_v22 }
  0xcb   : > { %v1014_v20 = vpop.f32.mrf.mxu1 }
  0xcc   : > { %1154 = vmatpush.bf16.msra.mxu3 %v3410_v49  ;;  %1195 = vmatpush.bf16.msrb.mxu0 %v3410_v49  ;;  %v1015_v21 = vadd.f32 %v3072_v1, %v1014_v20  ;;  %4082 = vst [vmem:[#allocation18_spill] sm:$0xff] %v3472_v28 }
  0xce   : > { %v1028_v26 = vpack.c.bf16 %v1015_v21, %v1013_v19 }
  0xcf   : > { %2791 = vmatmul.msk.bf16.vlgmr.msra.gmra.mxu3 %vm1134_vm8, %v3416_v51  ;;  %2795 = vmatmul.msk.bf16.vlgmr.msrb.gmra.mxu0 %vm1134_vm8, %v3412_v50 }
  0xd0   : > { %2788 = vmatmul.msk.bf16.gmra.mxu2 %vm1043_vm1, %v1028_v26  ;;  %1402 = vmatpush.bf16.msrb.mxu3 %v3526_v16 }
  0xd3   : > { %v1017_v29 = vpop.f32.mrf.mxu1 }
  0xd4   : > { %v1018_v30 = vadd.f32 %v3072_v1, %v1017_v29  ;;  %1403 = vmatpush.bf16.msrb.mxu3 %v3537_v23  ;;  %v3561_v29 = vld [vmem:[%s4024_s13 + $0x10] sm:$0xff] }
  0xd8   : > { %1404 = vmatpush.bf16.msrb.mxu3 %v3543_v24 }
  0xdb   : > { %v1019_v31 = vpop.f32.mrf.mxu1 }
  0xdc   : > { %v1020_v32 = vadd.f32 %v3072_v1, %v1019_v31  ;;  %v3573_v31 = vld [vmem:[%s4024_s13] sm:$0xff] }
  0xde   : > { %v1029_v33 = vpack.c.bf16 %v1020_v32, %v1018_v30  ;;  %v3567_v30 = vld [vmem:[%s4024_s13 + $0x8] sm:$0xff] }
  0xdf   : > { %2792 = vmatmul.msk.bf16.gmra.mxu3 %vm1134_vm8, %v3430_v60  ;;  %2796 = vmatmul.msk.bf16.gmra.mxu0 %vm1134_vm8, %v3432_v61 }
  0xe0   : > { %2789 = vmatmul.msk.bf16.gmra.mxu2 %vm1043_vm1, %v1029_v33 }
  0xe3   : > { %v1022_v35 = vpop.f32.mrf.mxu1 }
  0xe4   : > { %v1023_v36 = vadd.f32 %v3072_v1, %v1022_v35 }
  0xeb   : > { %v1024_v39 = vpop.f32.mrf.mxu1 }
  0xec   : > { %v1025_v42 = vadd.f32 %v3072_v1, %v1024_v39 }
  0xee   : > { %v1030_v43 = vpack.c.bf16 %v1025_v42, %v1023_v36  ;;  %v3073_v42 = vld [vmem:[%s4023_s12] ss:$0 sm:$0xff] }
  0xef   : > { %2793 = vmatmul.msk.bf16.gmra.mxu3 %vm1134_vm8, %v3453_v13  ;;  %2797 = vmatmul.msk.bf16.gmra.mxu0 %vm1134_vm8, %v3455_v14 }
  0xf0   : > { %2790 = vmatmul.msk.bf16.gmra.mxu2 %vm1043_vm1, %v1030_v43 }
  0xff   : > { %2794 = vmatmul.msk.bf16.gmra.mxu3 %vm1134_vm8, %v3470_v27  ;;  %2798 = vmatmul.msk.bf16.gmra.mxu0 %vm1134_vm8, %v3472_v28 }
 0x143   : > { %v1065_v19 = vpop.f32.mrf.mxu2 }
 0x14b   : > { %v1067_v20 = vpop.f32.mrf.mxu2 }
 0x14c   : > { %v1197_v52 = vpop.f32.mrf.mxu0 }
 0x152   : > { %v1156_v53 = vpop.f32.mrf.mxu3 }
 0x153   : > { %v1070_v21 = vpop.f32.mrf.mxu2 }
 0x154   : > { %v1199_v54 = vpop.f32.mrf.mxu0 }
 0x155   : > { %v1221_v55 = vpack.c.bf16 %v1199_v54, %v1197_v52 }
 0x157   : > { %2807 = vmatmul.msk.bf16.vlgmr.msrb.gmra.mxu1 %vm1134_vm8, %v1221_v55  ;;  %v3581_v55 = vadd.f32 %v3073_v42, %v1067_v20 }
 0x15a   : > { %v1158_v56 = vpop.f32.mrf.mxu3 }
 0x15b   : > { %v1217_v57 = vpack.c.bf16 %v1158_v56, %v1156_v53  ;;  %v1072_v22 = vpop.f32.mrf.mxu2  ;;  %v3579_v53 = vadd.f32 %v3073_v42, %v1065_v19 }
 0x15c   : > { %v1202_v58 = vpop.f32.mrf.mxu0 }
 0x15d   : > { %2819 = vmatmul.msk.bf16.vlgmr.msrb.gmra.mxu2 %vm1134_vm8, %v1217_v57 }
 0x162   : > { %v1161_v59 = vpop.f32.mrf.mxu3 }
 0x163   : > { %v1075_v25 = vpop.f32.mrf.mxu2 }
 0x164   : > { %v1204_v62 = vpop.f32.mrf.mxu0 }
 0x165   : > { %v1222_v63 = vpack.c.bf16 %v1204_v62, %v1202_v58 }
 0x167   : > { %2808 = vmatmul.msk.bf16.gmra.mxu1 %vm1134_vm8, %v1222_v63 }
 0x16a   : > { %v1163_v0 = vpop.f32.mrf.mxu3 }
 0x16b   : > { %v1218_v1 = vpack.c.bf16 %v1163_v0, %v1161_v59  ;;  %v1077_v26 = vpop.f32.mrf.mxu2 }
 0x16c   : > { %v1207_v2 = vpop.f32.mrf.mxu0 }
 0x16d   : > { %2820 = vmatmul.msk.bf16.gmra.mxu2 %vm1134_vm8, %v1218_v1 }
 0x172   : > { %v1166_v5 = vpop.f32.mrf.mxu3 }
 0x173   : > { %v1080_v32 = vpop.f32.mrf.mxu2 }
 0x174   : > { %v1209_v6 = vpop.f32.mrf.mxu0 }
 0x175   : > { %v1223_v7 = vpack.c.bf16 %v1209_v6, %v1207_v2 }
 0x177   : > { %2809 = vmatmul.msk.bf16.gmra.mxu1 %vm1134_vm8, %v1223_v7  ;;  %v3587_v7 = vadd.f32 %v3073_v42, %v1072_v22 }
 0x17a   : > { %v1168_v8 = vpop.f32.mrf.mxu3 }
 0x17b   : > { %v1219_v9 = vpack.c.bf16 %v1168_v8, %v1166_v5  ;;  %v1082_v35 = vpop.f32.mrf.mxu2  ;;  %v3585_v5 = vadd.f32 %v3073_v42, %v1070_v21 }
 0x17c   : > { %v1212_v10 = vpop.f32.mrf.mxu0 }
 0x17d   : > { %2821 = vmatmul.msk.bf16.gmra.mxu2 %vm1134_vm8, %v1219_v9 }
 0x182   : > { %v1171_v11 = vpop.f32.mrf.mxu3 }
 0x184   : > { %v1214_v12 = vpop.f32.mrf.mxu0 }
 0x185   : > { %v1224_v15 = vpack.c.bf16 %v1214_v12, %v1212_v10 }
 0x187   : > { %2810 = vmatmul.msk.bf16.gmra.mxu1 %vm1134_vm8, %v1224_v15 }
 0x18a   : > { %v1173_v17 = vpop.f32.mrf.mxu3 }
 0x18b   : > { %v1220_v18 = vpack.c.bf16 %v1173_v17, %v1171_v11 }
 0x18d   : > { %2822 = vmatmul.msk.bf16.gmra.mxu2 %vm1134_vm8, %v1220_v18 }
 0x197   : > { %2867 = vmatmul.msk.bf16.vlgmr.msra.gmra.mxu1 %vm1134_vm8, %v3410_v49  ;;  %v3555_v49 = vld [vmem:[%s4024_s13 + $0x18] sm:$0xff] }
 0x1a7   : > { %2868 = vmatmul.msk.bf16.gmra.mxu1 %vm1134_vm8, %v3396_v41  ;;  %v3549_v41 = vld [vmem:[%s4024_s13 + $0x20] sm:$0xff] }
 0x1a8   : > { %1405 = vmatpush.bf16.msrb.mxu3 %v3549_v41 }
 0x1ac   : > { %1406 = vmatpush.bf16.msrb.mxu3 %v3555_v49 }
 0x1b0   : > { %1407 = vmatpush.bf16.msrb.mxu3 %v3561_v29 }
 0x1b4   : > { %1408 = vmatpush.bf16.msrb.mxu3 %v3567_v30 }
 0x1b8   : > { %1409 = vmatpush.bf16.msrb.mxu3 %v3573_v31 }
 0x1d4   : > { %v1258_v33 = vpop.f32.mrf.mxu1 }
 0x1dc   : > { %v1260_v36 = vpop.f32.mrf.mxu1 }
 0x1e0   : > { %v1311_v39 = vpop.f32.mrf.mxu2 }
 0x1e1   : > { %v1312_v43 = vadd.f32 %v1311_v39, %v1258_v33  ;;  %v3591_v33 = vadd.f32 %v3073_v42, %v1075_v25 }
 0x1e3   : > { %v1331_v56 = vadd.f32 %v1312_v43, %v3579_v53 }
 0x1e4   : > { %v1263_v52 = vpop.f32.mrf.mxu1 }
 0x1e5   : > { %v1339_v59 = vmax.f32 %v1331_v56, 0.0 }
 0x1e8   : > { %v1313_v54 = vpop.f32.mrf.mxu2 }
 0x1e9   : > { %v1314_v57 = vadd.f32 %v1313_v54, %v1260_v36  ;;  %v3593_v36 = vadd.f32 %v3073_v42, %v1077_v26 }
 0x1eb   : > { %v1332_v58 = vadd.f32 %v1314_v57, %v3581_v55 }
 0x1ec   : > { %v1265_v0 = vpop.f32.mrf.mxu1 }
 0x1ed   : > { %v1340_v62 = vmax.f32 %v1332_v58, 0.0 }
 0x1ef   : > { %v1347_v63 = vpack.c.bf16 %v1340_v62, %v1339_v59  ;;  %v3597_v62 = vadd.f32 %v3073_v42, %v1080_v32  ;;  %v3606_v32 = vld [vmem:[%s4025_s14] ss:$0 sm:$0xff] }
 0x1f0   : > { %v1316_v1 = vpop.f32.mrf.mxu2 }
 0x1f1   : > { %1410 = vmatmul.bf16.vlgmr.msrb.gmra.mxu3 %v1347_v63  ;;  %v1317_v2 = vadd.f32 %v1316_v1, %v1263_v52 }
 0x1f3   : > { %v1333_v8 = vadd.f32 %v1317_v2, %v3585_v5 }
 0x1f4   : > { %v1268_v10 = vpop.f32.mrf.mxu1 }
 0x1f5   : > { %v1341_v12 = vmax.f32 %v1333_v8, 0.0 }
 0x1f8   : > { %v1318_v6 = vpop.f32.mrf.mxu2 }
 0x1f9   : > { %v1319_v9 = vadd.f32 %v1318_v6, %v1265_v0  ;;  %v3599_v0 = vadd.f32 %v3073_v42, %v1082_v35 }
 0x1fb   : > { %v1334_v11 = vadd.f32 %v1319_v9, %v3587_v7 }
 0x1fc   : > { %v1270_v19 = vpop.f32.mrf.mxu1 }
 0x1fd   : > { %v1342_v15 = vmax.f32 %v1334_v11, 0.0 }
 0x1ff   : > { %v1348_v17 = vpack.c.bf16 %v1342_v15, %v1341_v12 }
 0x200   : > { %v1321_v18 = vpop.f32.mrf.mxu2 }
 0x201   : > { %1415 = vmatmul.bf16.gmra.mxu3 %v1348_v17  ;;  %v1322_v20 = vadd.f32 %v1321_v18, %v1268_v10 }
 0x203   : > { %v1335_v22 = vadd.f32 %v1322_v20, %v3591_v33 }
 0x204   : > { %v1273_v56 = vpop.f32.mrf.mxu1 }
 0x205   : > { %v1343_v52 = vmax.f32 %v1335_v22, 0.0 }
 0x208   : > { %v1323_v21 = vpop.f32.mrf.mxu2 }
 0x209   : > { %v1324_v39 = vadd.f32 %v1323_v21, %v1270_v19 }
 0x20b   : > { %v1336_v43 = vadd.f32 %v1324_v39, %v3593_v36 }
 0x20c   : > { %v1275_v63 = vpop.f32.mrf.mxu1 }
 0x20d   : > { %v1344_v54 = vmax.f32 %v1336_v43, 0.0 }
 0x20f   : > { %v1349_v57 = vpack.c.bf16 %v1344_v54, %v1343_v52 }
 0x210   : > { %v1326_v58 = vpop.f32.mrf.mxu2 }
 0x211   : > { %1420 = vmatmul.bf16.gmra.mxu3 %v1349_v57  ;;  %v1327_v59 = vadd.f32 %v1326_v58, %v1273_v56 }
 0x213   : > { %v1337_v26 = vadd.f32 %v1327_v59, %v3597_v62 }
 0x215   : > { %v1345_v6 = vmax.f32 %v1337_v26, 0.0 }
 0x218   : > { %v1328_v25 = vpop.f32.mrf.mxu2 }
 0x219   : > { %v1329_v1 = vadd.f32 %v1328_v25, %v1275_v63 }
 0x21b   : > { %v1338_v2 = vadd.f32 %v1329_v1, %v3599_v0 }
 0x21d   : > { %v1346_v8 = vmax.f32 %v1338_v2, 0.0 }
 0x21f   : > { %v1350_v9 = vpack.c.bf16 %v1346_v8, %v1345_v6 }
 0x221   : > { %1425 = vmatmul.bf16.gmra.mxu3 %v1350_v9 }
 0x274   : > { %v1411_v10 = vpop.f32.mrf.mxu3 }
 0x275   : > { %v1412_v58 = vadd.f32 %v3606_v32, %v1411_v10  ;;  %v3647_v10 = vld [vmem:[%s4026_s15 + $0x18] sm:$0xff] }
 0x276   : > { %1607 = vmatpush.bf16.msra.mxu2 %v3647_v10 }
 0x27c   : > { %v1413_v11 = vpop.f32.mrf.mxu3 }
 0x27d   : > { %v1414_v57 = vadd.f32 %v3606_v32, %v1413_v11 }
 0x27f   : > { %v1431_v59 = vpack.c.bf16 %v1414_v57, %v1412_v58  ;;  %v3675_v58 = vld [vmem:[%s4029_s18 + $0x18] sm:$0xff] }
 0x280   : > { %1669 = vmatpush.bf16.msra.mxu3 %v3675_v58 }
 0x284   : > { %v1416_v12 = vpop.f32.mrf.mxu3 }
 0x285   : > { %v1417_v35 = vadd.f32 %v3606_v32, %v1416_v12  ;;  %v3653_v12 = vld [vmem:[%s4026_s15 + $0x10] sm:$0xff] }
 0x286   : > { %1608 = vmatpush.bf16.msra.mxu2 %v3653_v12 }
 0x28c   : > { %v1418_v15 = vpop.f32.mrf.mxu3 }
 0x28d   : > { %v1419_v42 = vadd.f32 %v3606_v32, %v1418_v15  ;;  %v3659_v15 = vld [vmem:[%s4026_s15 + $0x8] sm:$0xff] }
 0x28e   : > { %1609 = vmatpush.bf16.msra.mxu2 %v3659_v15 }
 0x28f   : > { %v1432_v17 = vpack.c.bf16 %v1419_v42, %v1417_v35  ;;  %v3665_v42 = vld [vmem:[%s4026_s15] sm:$0xff] }
 0x291   : > { %1457 = vrot.lane.b32.xlu0 %v1432_v17, %s3160_s0 }
 0x292   : > { %1610 = vmatpush.bf16.msra.mxu2 %v3665_v42 }
 0x294   : > { %v1421_v18 = vpop.f32.mrf.mxu3 }
 0x295   : > { %v1422_v20 = vadd.f32 %v3606_v32, %v1421_v18 }
 0x296   : > { %1781 = vmatpush.bf16.msrb.mxu2 %v3483_v44 }
 0x29a   : > { %1782 = vmatpush.bf16.msrb.mxu2 %v3494_v47 }
 0x29c   : > { %v1423_v19 = vpop.f32.mrf.mxu3 }
 0x29d   : > { %v1424_v21 = vadd.f32 %v3606_v32, %v1423_v19 }
 0x29f   : > { %v1433_v22 = vpack.c.bf16 %v1424_v21, %v1422_v20 }
 0x2a1   : > { %1459 = vrot.lane.b32.xlu2 %v1433_v22, %s3160_s0 }
 0x2a4   : > { %v1426_v39 = vpop.f32.mrf.mxu3 }
 0x2a5   : > { %v1427_v52 = vadd.f32 %v3606_v32, %v1426_v39 }
 0x2ac   : > { %v1428_v43 = vpop.f32.mrf.mxu3 }
 0x2ad   : > { %v1429_v54 = vadd.f32 %v3606_v32, %v1428_v43 }
 0x2af   : > { %v1434_v56 = vpack.c.bf16 %v1429_v54, %v1427_v52 }
 0x2b1   : > { %1461 = vrot.lane.b32.xlu1 %v1434_v56, %s3160_s0 }
 0x2b3   : > { %1493 = vxpose.xlu0.c.b16.start [1/4] (short) (narrow) %v3412_v50, 32 }
 0x2b9   : > { %1455 = vrot.lane.b32.xlu1 %v1431_v59, %s3160_s0 }
 0x2c3   : > { %1494 = vxpose.xlu0.c.b16.cont [2/4] (short) (narrow) %v3432_v61, 32 }
 0x2c7   : > { %1435 = vxpose.xlu2.c.b16.start [1/4] (short) (narrow) %v3416_v51, 32 }
 0x2d3   : > { %1495 = vxpose.xlu0.c.b16.cont [3/4] (short) (narrow) %v3455_v14, 32 }
 0x2d7   : > { %1436 = vxpose.xlu2.c.b16.cont [2/4] (short) (narrow) %v3430_v60, 32 }
 0x2e3   : > { %1496 = vxpose.xlu0.c.b16.end [4/4] (short) (narrow) %v3472_v28, 32 }
 0x2e7   : > { %1437 = vxpose.xlu2.c.b16.cont [3/4] (short) (narrow) %v3453_v13, 32 }
 0x2f7   : > { %1438 = vxpose.xlu2.c.b16.end [4/4] (short) (narrow) %v3470_v27, 32 }
 0x2fb   : > { %v1460_v25 = vpop.permute.xlu2 %1459 }
 0x303   : > { %v1458_v26 = vpop.permute.xlu0 %1457 }
 0x323   : > { %v1462_v63 = vpop.permute.xlu1 %1461 }
 0x324   : > { %1478 = vmatpush.bf16.msra.mxu0 %v1462_v63  ;;  %v3687_v63 = vld [vmem:[%s4029_s18 + $0x8] sm:$0xff] }
 0x328   : > { %1479 = vmatpush.bf16.msra.mxu0 %v1460_v25  ;;  %v3693_v25 = vld [vmem:[%s4029_s18] sm:$0xff] }
 0x32b   : > { %v1456_v1 = vpop.permute.xlu1 %1455 }
 0x32c   : > { %1480 = vmatpush.bf16.msra.mxu0 %v1458_v26  ;;  %v1563_v26 = vpop.f32.mrf.mxu1 }
 0x330   : > { %1481 = vmatpush.bf16.msra.mxu0 %v1456_v1 }
 0x334   : > { %1519 = vmatpush.bf16.msrb.mxu0 %v1434_v56 }
 0x338   : > { %1520 = vmatpush.bf16.msrb.mxu0 %v1433_v22 }
 0x33c   : > { %1521 = vmatpush.bf16.msrb.mxu0 %v1432_v17 }
 0x340   : > { %1522 = vmatpush.bf16.msrb.mxu0 %v1431_v59  ;;  %v3681_v59 = vld [vmem:[%s4029_s18 + $0x10] sm:$0xff] }
 0x341   : > { %1670 = vmatpush.bf16.msra.mxu3 %v3681_v59 }
 0x345   : > { %1671 = vmatpush.bf16.msra.mxu3 %v3687_v63 }
 0x349   : > { %1672 = vmatpush.bf16.msra.mxu3 %v3693_v25 }
 0x34d   : > { %1822 = vmatpush.bf16.msrb.mxu3 %v3489_v45 }
 0x351   : > { %1823 = vmatpush.bf16.msrb.mxu3 %v3501_v48 }
 0x35f   : > { %v3636_v8 = vpop.trf.xlu0 }
 0x368   : > { %v3628_v2 = vpop.trf.xlu2 }
 0x369   : > { %2855 = vmatmul.msk.bf16.vlgmr.msra.gmra.mxu0 %vm1467_vm6, %v3628_v2 }
 0x36f   : > { %v3640_v9 = vpop.trf.xlu0 }
 0x378   : > { %v3632_v6 = vpop.trf.xlu2 }
 0x379   : > { %2856 = vmatmul.msk.bf16.gmra.mxu0 %vm1467_vm6, %v3632_v6 }
 0x389   : > { %2857 = vmatmul.msk.bf16.vlgmr.msrb.gmra.mxu0 %vm1467_vm6, %v3636_v8 }
 0x399   : > { %2858 = vmatmul.msk.bf16.gmra.mxu0 %vm1467_vm6, %v3640_v9 }
 0x3e6   : > { %v1483_v11 = vpop.f32.mrf.mxu0 }
 0x3ee   : > { %v1485_v35 = vpop.f32.mrf.mxu0 }
 0x3f6   : > { %v1488_v17 = vpop.f32.mrf.mxu0 }
 0x3fe   : > { %v1490_v18 = vpop.f32.mrf.mxu0 }
 0x406   : > { %v1524_v19 = vpop.f32.mrf.mxu0 }
 0x407   : > { %v1525_v21 = vadd.f32 %v1524_v19, %v1483_v11  ;;  %v1565_v11 = vpop.f32.mrf.mxu1 }
 0x40e   : > { %v1526_v20 = vpop.f32.mrf.mxu0 }
 0x40f   : > { %v1527_v22 = vadd.f32 %v1526_v20, %v1485_v35 }
 0x411   : > { %v1534_v39 = vpack.c.bf16 %v1527_v22, %v1525_v21 }
 0x413   : > { %2885 = vmatmul.msk.bf16.vlgmr.msra.gmra.mxu2 %vm1467_vm6, %v1534_v39 }
 0x416   : > { %v1529_v43 = vpop.f32.mrf.mxu0 }
 0x417   : > { %v1530_v54 = vadd.f32 %v1529_v43, %v1488_v17  ;;  %v3701_v17 = vld [vmem:[%s4028_s17] ss:$0 sm:$0xff]  ;;  %v1568_v43 = vpop.f32.mrf.mxu1 }
 0x41e   : > { %v1531_v52 = vpop.f32.mrf.mxu0 }
 0x41f   : > { %v1532_v56 = vadd.f32 %v1531_v52, %v1490_v18 }
 0x421   : > { %v1535_v57 = vpack.c.bf16 %v1532_v56, %v1530_v54 }
 0x423   : > { %2886 = vmatmul.msk.bf16.gmra.mxu2 %vm1467_vm6, %v1535_v57  ;;  %v1570_v57 = vpop.f32.mrf.mxu1 }
 0x496   : > { %v1612_v1 = vpop.f32.mrf.mxu2 }
 0x497   : > { %v1613_v35 = vadd.f32 %v1612_v1, %v1563_v26 }
 0x499   : > { %v1625_v19 = vadd.f32 %v3701_v17, %v1613_v35 }
 0x49b   : > { %v1629_v22 = vmax.f32 %v1625_v19, 0.0 }
 0x49e   : > { %v1614_v18 = vpop.f32.mrf.mxu2 }
 0x49f   : > { %v1615_v20 = vadd.f32 %v1614_v18, %v1565_v11 }
 0x4a1   : > { %v1626_v21 = vadd.f32 %v3701_v17, %v1615_v20 }
 0x4a3   : > { %v1630_v39 = vmax.f32 %v1626_v21, 0.0 }
 0x4a5   : > { %v1633_v52 = vpack.c.bf16 %v1630_v39, %v1629_v22 }
 0x4a6   : > { %v1617_v54 = vpop.f32.mrf.mxu2 }
 0x4a7   : > { %2903 = vmatmul.msk.bf16.vlgmr.msra.gmra.mxu3 %vm1467_vm6, %v1633_v52  ;;  %v1618_v56 = vadd.f32 %v1617_v54, %v1568_v43  ;;  %v3715_v54 = vld [vmem:[%s4030_s19] ss:$0 sm:$0xff] }
 0x4a8   : > { %1966 = vmatpush.bf16.msra.mxu3 %v3511_v3 }
 0x4a9   : > { %v1627_v1 = vadd.f32 %v3701_v17, %v1618_v56 }
 0x4ab   : > { %v1631_v18 = vmax.f32 %v1627_v1, 0.0 }
 0x4ac   : > { %1967 = vmatpush.bf16.msra.mxu3 %v3517_v4 }
 0x4ae   : > { %v1619_v26 = vpop.f32.mrf.mxu2 }
 0x4af   : > { %v1620_v35 = vadd.f32 %v1619_v26, %v1570_v57 }
 0x4b1   : > { %v1628_v11 = vadd.f32 %v3701_v17, %v1620_v35 }
 0x4b3   : > { %v1632_v19 = vmax.f32 %v1628_v11, 0.0 }
 0x4b5   : > { %v1634_v20 = vpack.c.bf16 %v1632_v19, %v1631_v18 }
 0x4b7   : > { %2904 = vmatmul.msk.bf16.gmra.mxu3 %vm1467_vm6, %v1634_v20 }
 0x52a   : > { %v1674_v21 = vpop.f32.mrf.mxu3 }
 0x52b   : > { %v1684_v26 = vadd.f32 %v1674_v21, %v3402_v46 }
 0x52d   : > { %v3732_v18 = vadd.f32 %v3715_v54, %v1684_v26 }
 0x532   : > { %v1676_v22 = vpop.f32.mrf.mxu3 }
 0x533   : > { %v1685_v56 = vadd.f32 %v1676_v22, %v3392_v40 }
 0x53a   : > { %v1679_v39 = vpop.f32.mrf.mxu3 }
 0x53b   : > { %v1686_v52 = vadd.f32 %v1679_v39, %v3386_v37  ;;  %v3727_v37 = vadd.f32 %v3715_v54, %v1685_v56 }
 0x53d   : > { %v3721_v1 = vadd.f32 %v3715_v54, %v1686_v52 }
 0x542   : > { %v1681_v43 = vpop.f32.mrf.mxu3 }
 0x543   : > { %v1687_v57 = vadd.f32 %v1681_v43, %v3388_v38  ;;  %v1695_v38 = vpack.c.bf16 %v3727_v37, %v3732_v18 }
 0x545   : > { %v3724_v35 = vadd.f32 %v3715_v54, %v1687_v57 }
 0x547   : > { %v1696_v11 = vpack.c.bf16 %v3724_v35, %v3721_v1 }
 0x549   : > { %1703 = vmatpush.bf16.msra.mxu0 %v1696_v11  ;;  %1732 = vmatpush.bf16.msrb.mxu1 %v1696_v11 }
 0x54d   : > { %1704 = vmatpush.bf16.msra.mxu0 %v1695_v38  ;;  %1733 = vmatpush.bf16.msrb.mxu1 %v1695_v38 }
 0x550   : > { %2905 = vmatmul.msk.bf16.vlgmr.msra.gmra.mxu0 %vm1134_vm8, %v3416_v51  ;;  %2909 = vmatmul.msk.bf16.vlgmr.msrb.gmra.mxu1 %vm1134_vm8, %v3412_v50 }
 0x551   : > { %1865 = vmatpush.bf16.msrb.mxu0 %v3526_v16 }
 0x555   : > { %1866 = vmatpush.bf16.msrb.mxu0 %v3537_v23 }
 0x559   : > { %1867 = vmatpush.bf16.msrb.mxu0 %v3543_v24 }
 0x55d   : > { %1868 = vmatpush.bf16.msrb.mxu0 %v3549_v41 }
 0x560   : > { %2906 = vmatmul.msk.bf16.gmra.mxu0 %vm1134_vm8, %v3430_v60  ;;  %2910 = vmatmul.msk.bf16.gmra.mxu1 %vm1134_vm8, %v3432_v61 }
 0x561   : > { %1869 = vmatpush.bf16.msrb.mxu0 %v3555_v49 }
 0x565   : > { %1870 = vmatpush.bf16.msrb.mxu0 %v3561_v29 }
 0x569   : > { %1871 = vmatpush.bf16.msrb.mxu0 %v3567_v30 }
 0x56d   : > { %1872 = vmatpush.bf16.msrb.mxu0 %v3573_v31 }
 0x570   : > { %2907 = vmatmul.msk.bf16.gmra.mxu0 %vm1134_vm8, %v3453_v13  ;;  %2911 = vmatmul.msk.bf16.gmra.mxu1 %vm1134_vm8, %v3455_v14 }
 0x580   : > { %2908 = vmatmul.msk.bf16.gmra.mxu0 %vm1134_vm8, %v3470_v27  ;;  %2912 = vmatmul.msk.bf16.gmra.mxu1 %vm1134_vm8, %v3472_v28 }
 0x5cd   : > { %v1706_v40 = vpop.f32.mrf.mxu0  ;;  %v1735_v46 = vpop.f32.mrf.mxu1 }
 0x5d5   : > { %v1708_v19 = vpop.f32.mrf.mxu0  ;;  %v1737_v20 = vpop.f32.mrf.mxu1 }
 0x5d6   : > { %v1755_v21 = vpack.c.bf16 %v1708_v19, %v1706_v40  ;;  %v1759_v22 = vpack.c.bf16 %v1737_v20, %v1735_v46 }
 0x5d8   : > { %2913 = vmatmul.msk.bf16.vlgmr.msrb.gmra.mxu2 %vm1134_vm8, %v1759_v22  ;;  %2917 = vmatmul.msk.bf16.vlgmr.msrb.gmra.mxu3 %vm1134_vm8, %v1755_v21 }
 0x5dd   : > { %v1711_v39 = vpop.f32.mrf.mxu0  ;;  %v1740_v52 = vpop.f32.mrf.mxu1 }
 0x5e5   : > { %v1713_v43 = vpop.f32.mrf.mxu0  ;;  %v1742_v56 = vpop.f32.mrf.mxu1 }
 0x5e6   : > { %v1756_v57 = vpack.c.bf16 %v1713_v43, %v1711_v39  ;;  %v1760_v26 = vpack.c.bf16 %v1742_v56, %v1740_v52 }
 0x5e8   : > { %2914 = vmatmul.msk.bf16.gmra.mxu2 %vm1134_vm8, %v1760_v26  ;;  %2918 = vmatmul.msk.bf16.gmra.mxu3 %vm1134_vm8, %v1756_v57 }
 0x5ed   : > { %v1716_v34 = vpop.f32.mrf.mxu0  ;;  %v1745_v28 = vpop.f32.mrf.mxu1 }
 0x5f5   : > { %v1718_v27 = vpop.f32.mrf.mxu0  ;;  %v1747_v14 = vpop.f32.mrf.mxu1 }
 0x5f6   : > { %v1757_v40 = vpack.c.bf16 %v1718_v27, %v1716_v34  ;;  %v1761_v46 = vpack.c.bf16 %v1747_v14, %v1745_v28 }
 0x5f8   : > { %2915 = vmatmul.msk.bf16.gmra.mxu2 %vm1134_vm8, %v1761_v46  ;;  %2919 = vmatmul.msk.bf16.gmra.mxu3 %vm1134_vm8, %v1757_v40 }
 0x5fd   : > { %v1721_v19 = vpop.f32.mrf.mxu0  ;;  %v1750_v20 = vpop.f32.mrf.mxu1 }
 0x605   : > { %v1723_v21 = vpop.f32.mrf.mxu0  ;;  %v1752_v22 = vpop.f32.mrf.mxu1 }
 0x606   : > { %v1758_v39 = vpack.c.bf16 %v1723_v21, %v1721_v19  ;;  %v1762_v52 = vpack.c.bf16 %v1752_v22, %v1750_v20 }
 0x608   : > { %2916 = vmatmul.msk.bf16.gmra.mxu2 %vm1134_vm8, %v1762_v52  ;;  %2920 = vmatmul.msk.bf16.gmra.mxu3 %vm1134_vm8, %v1758_v39 }
 0x618   : > { %2925 = vmatmul.msk.bf16.vlgmr.msra.gmra.mxu3 %vm1134_vm8, %v1695_v38 }
 0x628   : > { %2926 = vmatmul.msk.bf16.gmra.mxu3 %vm1134_vm8, %v1696_v11 }
 0x65b   : > { %v1784_v34 = vpop.f32.mrf.mxu2  ;;  %v1825_v14 = vpop.f32.mrf.mxu3 }
 0x65c   : > { %v1826_v27 = vadd.f32 %v1825_v14, %v1784_v34 }
 0x65e   : > { %v1845_v56 = vadd.f32 %v1826_v27, %v3579_v53 }
 0x660   : > { %v1853_v40 = vmax.f32 %v1845_v56, 0.0 }
 0x663   : > { %v1786_v28 = vpop.f32.mrf.mxu2  ;;  %v1827_v43 = vpop.f32.mrf.mxu3 }
 0x664   : > { %v1828_v57 = vadd.f32 %v1827_v43, %v1786_v28 }
 0x666   : > { %v1846_v26 = vadd.f32 %v1828_v57, %v3581_v55 }
 0x668   : > { %v1854_v46 = vmax.f32 %v1846_v26, 0.0 }
 0x66a   : > { %v1861_v19 = vpack.c.bf16 %v1854_v46, %v1853_v40 }
 0x66b   : > { %v1789_v20 = vpop.f32.mrf.mxu2  ;;  %v1830_v21 = vpop.f32.mrf.mxu3 }
 0x66c   : > { %1873 = vmatmul.bf16.vlgmr.msrb.gmra.mxu0 %v1861_v19  ;;  %v1831_v22 = vadd.f32 %v1830_v21, %v1789_v20 }
 0x66e   : > { %v1847_v11 = vadd.f32 %v1831_v22, %v3585_v5 }
 0x670   : > { %v1855_v14 = vmax.f32 %v1847_v11, 0.0 }
 0x673   : > { %v1791_v38 = vpop.f32.mrf.mxu2  ;;  %v1832_v39 = vpop.f32.mrf.mxu3 }
 0x674   : > { %v1833_v52 = vadd.f32 %v1832_v39, %v1791_v38 }
 0x676   : > { %v1848_v34 = vadd.f32 %v1833_v52, %v3587_v7 }
 0x678   : > { %v1856_v13 = vmax.f32 %v1848_v34, 0.0 }
 0x67a   : > { %v1862_v27 = vpack.c.bf16 %v1856_v13, %v1855_v14 }
 0x67b   : > { %v1794_v28 = vpop.f32.mrf.mxu2  ;;  %v1835_v43 = vpop.f32.mrf.mxu3 }
 0x67c   : > { %1878 = vmatmul.bf16.gmra.mxu0 %v1862_v27  ;;  %v1836_v56 = vadd.f32 %v1835_v43, %v1794_v28 }
 0x67e   : > { %v1849_v40 = vadd.f32 %v1836_v56, %v3591_v33 }
 0x680   : > { %v1857_v20 = vmax.f32 %v1849_v40, 0.0 }
 0x683   : > { %v1796_v57 = vpop.f32.mrf.mxu2  ;;  %v1837_v26 = vpop.f32.mrf.mxu3 }
 0x684   : > { %v1838_v46 = vadd.f32 %v1837_v26, %v1796_v57 }
 0x686   : > { %v1850_v19 = vadd.f32 %v1838_v46, %v3593_v36 }
 0x688   : > { %v1858_v21 = vmax.f32 %v1850_v19, 0.0 }
 0x68a   : > { %v1863_v22 = vpack.c.bf16 %v1858_v21, %v1857_v20 }
 0x68b   : > { %v1799_v38 = vpop.f32.mrf.mxu2  ;;  %v1840_v39 = vpop.f32.mrf.mxu3 }
 0x68c   : > { %1883 = vmatmul.bf16.gmra.mxu0 %v1863_v22  ;;  %v1841_v11 = vadd.f32 %v1840_v39, %v1799_v38 }
 0x68e   : > { %v1851_v34 = vadd.f32 %v1841_v11, %v3597_v62 }
 0x690   : > { %v1859_v28 = vmax.f32 %v1851_v34, 0.0 }
 0x693   : > { %v1801_v52 = vpop.f32.mrf.mxu2  ;;  %v1842_v13 = vpop.f32.mrf.mxu3 }
 0x694   : > { %v1843_v14 = vadd.f32 %v1842_v13, %v1801_v52 }
 0x696   : > { %v1852_v27 = vadd.f32 %v1843_v14, %v3599_v0 }
 0x698   : > { %v1860_v43 = vmax.f32 %v1852_v27, 0.0 }
 0x69a   : > { %v1864_v56 = vpack.c.bf16 %v1860_v43, %v1859_v28 }
 0x69c   : > { %1888 = vmatmul.bf16.gmra.mxu0 %v1864_v56 }
 0x6e9   : > { %v1874_v57 = vpop.f32.mrf.mxu0 }
 0x6ea   : > { %v1875_v56 = vadd.f32 %v3606_v32, %v1874_v57 }
 0x6f1   : > { %v1876_v26 = vpop.f32.mrf.mxu0 }
 0x6f2   : > { %v1877_v28 = vadd.f32 %v3606_v32, %v1876_v26 }
 0x6f9   : > { %v1879_v40 = vpop.f32.mrf.mxu0 }
 0x6fa   : > { %v1880_v27 = vadd.f32 %v3606_v32, %v1879_v40 }
 0x701   : > { %v1881_v46 = vpop.f32.mrf.mxu0 }
 0x702   : > { %v1882_v14 = vadd.f32 %v3606_v32, %v1881_v46 }
 0x704   : > { %v1895_v43 = vpack.c.bf16 %v1882_v14, %v1880_v27 }
 0x709   : > { %v1884_v19 = vpop.f32.mrf.mxu0 }
 0x70a   : > { %v1885_v21 = vadd.f32 %v3606_v32, %v1884_v19  ;;  %v1894_v19 = vpack.c.bf16 %v1877_v28, %v1875_v56 }
 0x711   : > { %v1886_v20 = vpop.f32.mrf.mxu0 }
 0x712   : > { %v1887_v22 = vadd.f32 %v3606_v32, %v1886_v20 }
 0x714   : > { %v1896_v38 = vpack.c.bf16 %v1887_v22, %v1885_v21 }
 0x716   : > { %1906 = vrot.lane.b32.xlu1 %v1896_v38, %s3160_s0 }
 0x719   : > { %v1889_v39 = vpop.f32.mrf.mxu0 }
 0x71a   : > { %v1890_v52 = vadd.f32 %v3606_v32, %v1889_v39 }
 0x721   : > { %v1891_v11 = vpop.f32.mrf.mxu0 }
 0x722   : > { %v1892_v13 = vadd.f32 %v3606_v32, %v1891_v11 }
 0x724   : > { %v1897_v34 = vpack.c.bf16 %v1892_v13, %v1890_v52 }
 0x726   : > { %1908 = vrot.lane.b32.xlu1 %v1897_v34, %s3160_s0  ;;  %1937 = vmatpush.bf16.msra.mxu2 %v1897_v34 }
 0x72a   : > { %1938 = vmatpush.bf16.msra.mxu2 %v1896_v38 }
 0x72e   : > { %1904 = vrot.lane.b32.xlu1 %v1895_v43, %s3160_s0  ;;  %1939 = vmatpush.bf16.msra.mxu2 %v1895_v43 }
 0x732   : > { %1940 = vmatpush.bf16.msra.mxu2 %v1894_v19 }
 0x735   : > { %2923 = vmatmul.msk.bf16.vlgmr.msra.gmra.mxu2 %vm1467_vm6, %v3636_v8 }
 0x736   : > { %2024 = vmatpush.bf16.msrb.mxu2 %v3675_v58  ;;  %1902 = vrot.lane.b32.xlu1 %v1894_v19, %s3160_s0 }
 0x73a   : > { %2025 = vmatpush.bf16.msrb.mxu2 %v3681_v59 }
 0x73e   : > { %2026 = vmatpush.bf16.msrb.mxu2 %v3687_v63 }
 0x742   : > { %2027 = vmatpush.bf16.msrb.mxu2 %v3693_v25 }
 0x745   : > { %2924 = vmatmul.msk.bf16.gmra.mxu2 %vm1467_vm6, %v3640_v9 }
 0x746   : > { %2174 = vmatpush.bf16.msra.mxu2 %v3489_v45 }
 0x74a   : > { %2175 = vmatpush.bf16.msra.mxu2 %v3501_v48 }
 0x788   : > { %v1907_v57 = vpop.permute.xlu1 %1906 }
 0x798   : > { %v1909_v26 = vpop.permute.xlu1 %1908 }
 0x799   : > { %1918 = vmatpush.bf16.msra.mxu1 %v1909_v26 }
 0x79d   : > { %1919 = vmatpush.bf16.msra.mxu1 %v1907_v57 }
 0x7a0   : > { %v1905_v40 = vpop.permute.xlu1 %1904 }
 0x7a1   : > { %1920 = vmatpush.bf16.msra.mxu1 %v1905_v40 }
 0x7a8   : > { %v1903_v46 = vpop.permute.xlu1 %1902 }
 0x7a9   : > { %1921 = vmatpush.bf16.msra.mxu1 %v1903_v46 }
 0x7ac   : > { %2921 = vmatmul.msk.bf16.vlgmr.msra.gmra.mxu1 %vm1467_vm6, %v3628_v2 }
 0x7ad   : > { %1989 = vmatpush.bf16.msrb.mxu1 %v3647_v10 }
 0x7b1   : > { %1990 = vmatpush.bf16.msrb.mxu1 %v3653_v12 }
 0x7b5   : > { %1991 = vmatpush.bf16.msrb.mxu1 %v3659_v15 }
 0x7b8   : > { %v1942_v45 = vpop.f32.mrf.mxu2 }
 0x7b9   : > { %1992 = vmatpush.bf16.msrb.mxu1 %v3665_v42 }
 0x7bc   : > { %2922 = vmatmul.msk.bf16.gmra.mxu1 %vm1467_vm6, %v3632_v6 }
 0x7bd   : > { %2133 = vmatpush.bf16.msra.mxu1 %v3483_v44 }
 0x7c0   : > { %v1944_v20 = vpop.f32.mrf.mxu2 }
 0x7c1   : > { %2134 = vmatpush.bf16.msra.mxu1 %v3494_v47  ;;  %v1969_v47 = vpop.f32.mrf.mxu3 }
 0x7c8   : > { %v1947_v11 = vpop.f32.mrf.mxu2 }
 0x7c9   : > { %v1971_v43 = vpop.f32.mrf.mxu3 }
 0x7d0   : > { %v1949_v13 = vpop.f32.mrf.mxu2 }
 0x829   : > { %v1923_v48 = vpop.f32.mrf.mxu1 }
 0x82a   : > { %v1943_v22 = vadd.f32 %v1942_v45, %v1923_v48  ;;  %v1974_v48 = vpop.f32.mrf.mxu3 }
 0x831   : > { %v1925_v21 = vpop.f32.mrf.mxu1 }
 0x832   : > { %v1945_v38 = vadd.f32 %v1944_v20, %v1925_v21 }
 0x834   : > { %v1952_v39 = vpack.c.bf16 %v1945_v38, %v1943_v22  ;;  %v1976_v38 = vpop.f32.mrf.mxu3 }
 0x836   : > { %2927 = vmatmul.msk.bf16.vlgmr.msrb.gmra.mxu1 %vm1467_vm6, %v1952_v39 }
 0x839   : > { %v1928_v52 = vpop.f32.mrf.mxu1 }
 0x83a   : > { %v1948_v14 = vadd.f32 %v1947_v11, %v1928_v52 }
 0x841   : > { %v1930_v34 = vpop.f32.mrf.mxu1 }
 0x842   : > { %v1950_v44 = vadd.f32 %v1949_v13, %v1930_v34 }
 0x844   : > { %v1953_v27 = vpack.c.bf16 %v1950_v44, %v1948_v14 }
 0x846   : > { %2928 = vmatmul.msk.bf16.gmra.mxu1 %vm1467_vm6, %v1953_v27 }
 0x8b3   : > { %v1994_v28 = vpop.f32.mrf.mxu1 }
 0x8b4   : > { %v1995_v56 = vadd.f32 %v1994_v28, %v1969_v47 }
 0x8b6   : > { %v2004_v57 = vadd.f32 %v3701_v17, %v1995_v56 }
 0x8b8   : > { %v2008_v46 = vmax.f32 %v2004_v57, 0.0 }
 0x8bb   : > { %v1996_v19 = vpop.f32.mrf.mxu1 }
 0x8bc   : > { %v1997_v26 = vadd.f32 %v1996_v19, %v1971_v43 }
 0x8be   : > { %v2005_v40 = vadd.f32 %v3701_v17, %v1997_v26 }
 0x8c0   : > { %v2009_v45 = vmax.f32 %v2005_v40, 0.0 }
 0x8c2   : > { %v2012_v20 = vpack.c.bf16 %v2009_v45, %v2008_v46 }
 0x8c3   : > { %v1999_v21 = vpop.f32.mrf.mxu1 }
 0x8c4   : > { %2929 = vmatmul.msk.bf16.vlgmr.msrb.gmra.mxu2 %vm1467_vm6, %v2012_v20  ;;  %v2000_v22 = vadd.f32 %v1999_v21, %v1974_v48 }
 0x8c5   : > { %2318 = vmatpush.bf16.msrb.mxu2 %v3511_v3 }
 0x8c6   : > { %v2006_v11 = vadd.f32 %v3701_v17, %v2000_v22 }
 0x8c8   : > { %v2010_v34 = vmax.f32 %v2006_v11, 0.0 }
 0x8c9   : > { %2319 = vmatpush.bf16.msrb.mxu2 %v3517_v4 }
 0x8cb   : > { %v2001_v39 = vpop.f32.mrf.mxu1 }
 0x8cc   : > { %v2002_v52 = vadd.f32 %v2001_v39, %v1976_v38 }
 0x8ce   : > { %v2007_v13 = vadd.f32 %v3701_v17, %v2002_v52 }
 0x8d0   : > { %v2011_v14 = vmax.f32 %v2007_v13, 0.0 }
 0x8d2   : > { %v2013_v44 = vpack.c.bf16 %v2011_v14, %v2010_v34 }
 0x8d4   : > { %2930 = vmatmul.msk.bf16.gmra.mxu2 %vm1467_vm6, %v2013_v44 }
 0x947   : > { %v2029_v27 = vpop.f32.mrf.mxu2 }
 0x948   : > { %v2039_v19 = vadd.f32 %v2029_v27, %v3732_v18 }
 0x94f   : > { %v2031_v47 = vpop.f32.mrf.mxu2 }
 0x950   : > { %v2040_v4 = vadd.f32 %v2031_v47, %v3727_v37 }
 0x952   : > { %v3831_v40 = vadd.f32 %v3715_v54, %v2040_v4 }
 0x957   : > { %v2034_v28 = vpop.f32.mrf.mxu2 }
 0x958   : > { %v2041_v3 = vadd.f32 %v2034_v28, %v3721_v1  ;;  %v3836_v1 = vadd.f32 %v3715_v54, %v2039_v19 }
 0x95a   : > { %v3825_v57 = vadd.f32 %v3715_v54, %v2041_v3 }
 0x95f   : > { %v2036_v43 = vpop.f32.mrf.mxu2 }
 0x960   : > { %v2042_v56 = vadd.f32 %v2036_v43, %v3724_v35  ;;  %v2047_v35 = vpack.c.bf16 %v3831_v40, %v3836_v1 }
 0x962   : > { %v3828_v26 = vadd.f32 %v3715_v54, %v2042_v56 }
 0x964   : > { %v2048_v46 = vpack.c.bf16 %v3828_v26, %v3825_v57 }
 0x966   : > { %2055 = vmatpush.bf16.msrb.mxu3 %v2048_v46  ;;  %2084 = vmatpush.bf16.msra.mxu0 %v2048_v46 }
 0x96a   : > { %2056 = vmatpush.bf16.msrb.mxu3 %v2047_v35  ;;  %2085 = vmatpush.bf16.msra.mxu0 %v2047_v35 }
 0x96d   : > { %2931 = vmatmul.msk.bf16.vlgmr.msrb.gmra.mxu3 %vm1134_vm8, %v3416_v51  ;;  %2935 = vmatmul.msk.bf16.vlgmr.msra.gmra.mxu0 %vm1134_vm8, %v3412_v50  ;;  %v4083_v50 = vld [vmem:[#allocation15_spill] sm:$0xff]  ;;  %v4084_v51 = vld [vmem:[#allocation16_spill] sm:$0xff] }
 0x96e   : > { %2217 = vmatpush.bf16.msra.mxu3 %v3526_v16  ;;  %v4085_v16 = vld [vmem:[#allocation17_spill] sm:$0xff] }
 0x972   : > { %2218 = vmatpush.bf16.msra.mxu3 %v3537_v23  ;;  %v4086_v23 = vld [vmem:[#allocation18_spill] sm:$0xff] }
 0x976   : > { %2219 = vmatpush.bf16.msra.mxu3 %v3543_v24 }
 0x97a   : > { %2220 = vmatpush.bf16.msra.mxu3 %v3549_v41 }
 0x97d   : > { %2932 = vmatmul.msk.bf16.gmra.mxu3 %vm1134_vm8, %v3430_v60  ;;  %2936 = vmatmul.msk.bf16.gmra.mxu0 %vm1134_vm8, %v3432_v61 }
 0x97e   : > { %2221 = vmatpush.bf16.msra.mxu3 %v3555_v49 }
 0x982   : > { %2222 = vmatpush.bf16.msra.mxu3 %v3561_v29 }
 0x986   : > { %2223 = vmatpush.bf16.msra.mxu3 %v3567_v30 }
 0x98a   : > { %2224 = vmatpush.bf16.msra.mxu3 %v3573_v31 }
 0x98d   : > { %2933 = vmatmul.msk.bf16.gmra.mxu3 %vm1134_vm8, %v4083_v50  ;;  %2937 = vmatmul.msk.bf16.gmra.mxu0 %vm1134_vm8, %v4084_v51 }
 0x99d   : > { %2934 = vmatmul.msk.bf16.gmra.mxu3 %vm1134_vm8, %v4085_v16  ;;  %2938 = vmatmul.msk.bf16.gmra.mxu0 %vm1134_vm8, %v4086_v23 }
 0x9ea   : > { %v2087_v60 = vpop.f32.mrf.mxu0 }
 0x9f0   : > { %v2058_v61 = vpop.f32.mrf.mxu3 }
 0x9f2   : > { %v2089_v24 = vpop.f32.mrf.mxu0 }
 0x9f3   : > { %v2111_v41 = vpack.c.bf16 %v2089_v24, %v2087_v60 }
 0x9f5   : > { %2939 = vmatmul.msk.bf16.vlgmr.msra.gmra.mxu1 %vm1134_vm8, %v2111_v41 }
 0x9f8   : > { %v2060_v49 = vpop.f32.mrf.mxu3 }
 0x9f9   : > { %v2107_v29 = vpack.c.bf16 %v2060_v49, %v2058_v61 }
 0x9fa   : > { %v2092_v30 = vpop.f32.mrf.mxu0 }
 0x9fb   : > { %2943 = vmatmul.msk.bf16.vlgmr.msra.gmra.mxu2 %vm1134_vm8, %v2107_v29 }
 0xa00   : > { %v2063_v31 = vpop.f32.mrf.mxu3 }
 0xa02   : > { %v2094_v37 = vpop.f32.mrf.mxu0 }
 0xa03   : > { %v2112_v18 = vpack.c.bf16 %v2094_v37, %v2092_v30 }
 0xa05   : > { %2940 = vmatmul.msk.bf16.gmra.mxu1 %vm1134_vm8, %v2112_v18 }
 0xa08   : > { %v2065_v45 = vpop.f32.mrf.mxu3 }
 0xa09   : > { %v2108_v48 = vpack.c.bf16 %v2065_v45, %v2063_v31 }
 0xa0a   : > { %v2097_v20 = vpop.f32.mrf.mxu0 }
 0xa0b   : > { %2944 = vmatmul.msk.bf16.gmra.mxu2 %vm1134_vm8, %v2108_v48 }
 0xa10   : > { %v2068_v21 = vpop.f32.mrf.mxu3 }
 0xa12   : > { %v2099_v22 = vpop.f32.mrf.mxu0 }
 0xa13   : > { %v2113_v38 = vpack.c.bf16 %v2099_v22, %v2097_v20 }
 0xa15   : > { %2941 = vmatmul.msk.bf16.gmra.mxu1 %vm1134_vm8, %v2113_v38 }
 0xa18   : > { %v2070_v39 = vpop.f32.mrf.mxu3 }
 0xa19   : > { %v2109_v11 = vpack.c.bf16 %v2070_v39, %v2068_v21 }
 0xa1a   : > { %v2102_v52 = vpop.f32.mrf.mxu0 }
 0xa1b   : > { %2945 = vmatmul.msk.bf16.gmra.mxu2 %vm1134_vm8, %v2109_v11 }
 0xa20   : > { %v2073_v13 = vpop.f32.mrf.mxu3 }
 0xa22   : > { %v2104_v34 = vpop.f32.mrf.mxu0 }
 0xa23   : > { %v2114_v14 = vpack.c.bf16 %v2104_v34, %v2102_v52 }
 0xa25   : > { %2942 = vmatmul.msk.bf16.gmra.mxu1 %vm1134_vm8, %v2114_v14 }
 0xa28   : > { %v2075_v44 = vpop.f32.mrf.mxu3 }
 0xa29   : > { %v2110_v27 = vpack.c.bf16 %v2075_v44, %v2073_v13 }
 0xa2b   : > { %2946 = vmatmul.msk.bf16.gmra.mxu2 %vm1134_vm8, %v2110_v27 }
 0xa3b   : > { %2951 = vmatmul.msk.bf16.vlgmr.msrb.gmra.mxu2 %vm1134_vm8, %v2047_v35 }
 0xa4b   : > { %2952 = vmatmul.msk.bf16.gmra.mxu2 %vm1134_vm8, %v2048_v46 }
 0xa72   : > { %v2136_v47 = vpop.f32.mrf.mxu1 }
 0xa7a   : > { %v2138_v28 = vpop.f32.mrf.mxu1 }
 0xa7e   : > { %v2177_v3 = vpop.f32.mrf.mxu2 }
 0xa7f   : > { %v2178_v43 = vadd.f32 %v2177_v3, %v2136_v47 }
 0xa81   : > { %v2197_v19 = vadd.f32 %v2178_v43, %v3579_v53 }
 0xa82   : > { %v2141_v4 = vpop.f32.mrf.mxu1 }
 0xa83   : > { %v2205_v16 = vmax.f32 %v2197_v19, 0.0 }
 0xa86   : > { %v2179_v56 = vpop.f32.mrf.mxu2 }
 0xa87   : > { %v2180_v50 = vadd.f32 %v2179_v56, %v2138_v28 }
 0xa89   : > { %v2198_v51 = vadd.f32 %v2180_v50, %v3581_v55 }
 0xa8a   : > { %v2143_v61 = vpop.f32.mrf.mxu1 }
 0xa8b   : > { %v2206_v23 = vmax.f32 %v2198_v51, 0.0 }
 0xa8d   : > { %v2213_v60 = vpack.c.bf16 %v2206_v23, %v2205_v16 }
 0xa8e   : > { %v2182_v24 = vpop.f32.mrf.mxu2 }
 0xa8f   : > { %2225 = vmatmul.bf16.vlgmr.msra.gmra.mxu3 %v2213_v60  ;;  %v2183_v35 = vadd.f32 %v2182_v24, %v2141_v4 }
 0xa91   : > { %v2199_v46 = vadd.f32 %v2183_v35, %v3585_v5 }
 0xa92   : > { %v2146_v29 = vpop.f32.mrf.mxu1 }
 0xa93   : > { %v2207_v31 = vmax.f32 %v2199_v46, 0.0 }
 0xa96   : > { %v2184_v41 = vpop.f32.mrf.mxu2 }
 0xa97   : > { %v2185_v49 = vadd.f32 %v2184_v41, %v2143_v61 }
 0xa99   : > { %v2200_v30 = vadd.f32 %v2185_v49, %v3587_v7 }
 0xa9a   : > { %v2148_v55 = vpop.f32.mrf.mxu1 }
 0xa9b   : > { %v2208_v37 = vmax.f32 %v2200_v30, 0.0 }
 0xa9d   : > { %v2214_v53 = vpack.c.bf16 %v2208_v37, %v2207_v31 }
 0xa9e   : > { %v2187_v18 = vpop.f32.mrf.mxu2 }
 0xa9f   : > { %2230 = vmatmul.bf16.gmra.mxu3 %v2214_v53  ;;  %v2188_v45 = vadd.f32 %v2187_v18, %v2146_v29 }
 0xaa1   : > { %v2201_v20 = vadd.f32 %v2188_v45, %v3591_v33 }
 0xaa2   : > { %v2151_v5 = vpop.f32.mrf.mxu1 }
 0xaa3   : > { %v2209_v38 = vmax.f32 %v2201_v20, 0.0 }
 0xaa6   : > { %v2189_v48 = vpop.f32.mrf.mxu2 }
 0xaa7   : > { %v2190_v21 = vadd.f32 %v2189_v48, %v2148_v55 }
 0xaa9   : > { %v2202_v22 = vadd.f32 %v2190_v21, %v3593_v36 }
 0xaaa   : > { %v2153_v13 = vpop.f32.mrf.mxu1 }
 0xaab   : > { %v2210_v39 = vmax.f32 %v2202_v22, 0.0 }
 0xaad   : > { %v2215_v11 = vpack.c.bf16 %v2210_v39, %v2209_v38 }
 0xaae   : > { %v2192_v52 = vpop.f32.mrf.mxu2 }
 0xaaf   : > { %2235 = vmatmul.bf16.gmra.mxu3 %v2215_v11  ;;  %v2193_v7 = vadd.f32 %v2192_v52, %v2151_v5 }
 0xab1   : > { %v2203_v14 = vadd.f32 %v2193_v7, %v3597_v62 }
 0xab3   : > { %v2211_v47 = vmax.f32 %v2203_v14, 0.0 }
 0xab6   : > { %v2194_v34 = vpop.f32.mrf.mxu2 }
 0xab7   : > { %v2195_v44 = vadd.f32 %v2194_v34, %v2153_v13 }
 0xab9   : > { %v2204_v27 = vadd.f32 %v2195_v44, %v3599_v0 }
 0xabb   : > { %v2212_v28 = vmax.f32 %v2204_v27, 0.0 }
 0xabd   : > { %v2216_v33 = vpack.c.bf16 %v2212_v28, %v2211_v47 }
 0xabf   : > { %2240 = vmatmul.bf16.gmra.mxu3 %v2216_v33 }
 0xb12   : > { %v2226_v3 = vpop.f32.mrf.mxu3 }
 0xb13   : > { %v2227_v49 = vadd.f32 %v3606_v32, %v2226_v3 }
 0xb1a   : > { %v2228_v36 = vpop.f32.mrf.mxu3 }
 0xb1b   : > { %v2229_v41 = vadd.f32 %v3606_v32, %v2228_v36 }
 0xb1d   : > { %v2246_v29 = vpack.c.bf16 %v2229_v41, %v2227_v49 }
 0xb22   : > { %v2231_v43 = vpop.f32.mrf.mxu3 }
 0xb23   : > { %v2232_v35 = vadd.f32 %v3606_v32, %v2231_v43  ;;  %v3021_v43 = vld [vmem:[%s4031_s20 + $0x8] sm:$0xff] }
 0xb24   : > { %2433 = vmatpush.bf16.msra.mxu2 %v3021_v43 }
 0xb2a   : > { %v2233_v4 = vpop.f32.mrf.mxu3 }
 0xb2b   : > { %v2234_v24 = vadd.f32 %v3606_v32, %v2233_v4  ;;  %v3020_v4 = vld [vmem:[%s4031_s20] sm:$0xff] }
 0xb2c   : > { %2434 = vmatpush.bf16.msra.mxu2 %v3020_v4 }
 0xb2d   : > { %v2247_v46 = vpack.c.bf16 %v2234_v24, %v2232_v35 }
 0xb32   : > { %v2236_v56 = vpop.f32.mrf.mxu3 }
 0xb33   : > { %v2237_v50 = vadd.f32 %v3606_v32, %v2236_v56 }
 0xb3a   : > { %v2238_v19 = vpop.f32.mrf.mxu3 }
 0xb3b   : > { %v2239_v51 = vadd.f32 %v3606_v32, %v2238_v19 }
 0xb3d   : > { %v2248_v16 = vpack.c.bf16 %v2239_v51, %v2237_v50 }
 0xb3f   : > { %2258 = vrot.lane.b32.xlu1 %v2248_v16, %s3160_s0 }
 0xb42   : > { %v2241_v62 = vpop.f32.mrf.mxu3 }
 0xb43   : > { %v2242_v0 = vadd.f32 %v3606_v32, %v2241_v62 }
 0xb4a   : > { %v2243_v23 = vpop.f32.mrf.mxu3 }
 0xb4b   : > { %v2244_v60 = vadd.f32 %v3606_v32, %v2243_v23 }
 0xb4d   : > { %v2249_v61 = vpack.c.bf16 %v2244_v60, %v2242_v0 }
 0xb4f   : > { %2260 = vrot.lane.b32.xlu1 %v2249_v61, %s3160_s0  ;;  %2289 = vmatpush.bf16.msrb.mxu1 %v2249_v61 }
 0xb53   : > { %2290 = vmatpush.bf16.msrb.mxu1 %v2248_v16 }
 0xb57   : > { %2256 = vrot.lane.b32.xlu1 %v2247_v46, %s3160_s0  ;;  %2291 = vmatpush.bf16.msrb.mxu1 %v2247_v46 }
 0xb5b   : > { %2292 = vmatpush.bf16.msrb.mxu1 %v2246_v29 }
 0xb5e   : > { %2949 = vmatmul.msk.bf16.vlgmr.msrb.gmra.mxu1 %vm1467_vm6, %v3636_v8 }
 0xb5f   : > { %2376 = vmatpush.bf16.msra.mxu1 %v3675_v58  ;;  %2254 = vrot.lane.b32.xlu1 %v2246_v29, %s3160_s0 }
 0xb63   : > { %2377 = vmatpush.bf16.msra.mxu1 %v3681_v59 }
 0xb67   : > { %2378 = vmatpush.bf16.msra.mxu1 %v3687_v63 }
 0xb6b   : > { %2379 = vmatpush.bf16.msra.mxu1 %v3693_v25 }
 0xb6e   : > { %2950 = vmatmul.msk.bf16.gmra.mxu1 %vm1467_vm6, %v3640_v9 }
 0xbb1   : > { %v2259_v32 = vpop.permute.xlu1 %2258 }
 0xbc1   : > { %v2261_v30 = vpop.permute.xlu1 %2260 }
 0xbc2   : > { %2270 = vmatpush.bf16.msrb.mxu0 %v2261_v30 }
 0xbc6   : > { %2271 = vmatpush.bf16.msrb.mxu0 %v2259_v32 }
 0xbc9   : > { %v2257_v31 = vpop.permute.xlu1 %2256 }
 0xbca   : > { %2272 = vmatpush.bf16.msrb.mxu0 %v2257_v31 }
 0xbd1   : > { %v2255_v58 = vpop.permute.xlu1 %2254 }
 0xbd2   : > { %2273 = vmatpush.bf16.msrb.mxu0 %v2255_v58 }
 0xbd5   : > { %2947 = vmatmul.msk.bf16.vlgmr.msrb.gmra.mxu0 %vm1467_vm6, %v3628_v2 }
 0xbd6   : > { %2341 = vmatpush.bf16.msra.mxu0 %v3647_v10 }
 0xbda   : > { %2342 = vmatpush.bf16.msra.mxu0 %v3653_v12 }
 0xbdb   : > { %v2294_v8 = vpop.f32.mrf.mxu1 }
 0xbde   : > { %2343 = vmatpush.bf16.msra.mxu0 %v3659_v15 }
 0xbe2   : > { %2344 = vmatpush.bf16.msra.mxu0 %v3665_v42  ;;  %v2321_v42 = vpop.f32.mrf.mxu2 }
 0xbe3   : > { %v2296_v59 = vpop.f32.mrf.mxu1 }
 0xbe5   : > { %2948 = vmatmul.msk.bf16.gmra.mxu0 %vm1467_vm6, %v3632_v6 }
 0xbea   : > { %v2323_v48 = vpop.f32.mrf.mxu2 }
 0xbeb   : > { %v2299_v10 = vpop.f32.mrf.mxu1 }
 0xbf2   : > { %v2326_v52 = vpop.f32.mrf.mxu2 }
 0xbf3   : > { %v2301_v18 = vpop.f32.mrf.mxu1 }
 0xbfa   : > { %v2328_v14 = vpop.f32.mrf.mxu2 }
 0xc52   : > { %v2275_v9 = vpop.f32.mrf.mxu0 }
 0xc53   : > { %v2295_v25 = vadd.f32 %v2294_v8, %v2275_v9 }
 0xc5a   : > { %v2277_v63 = vpop.f32.mrf.mxu0 }
 0xc5b   : > { %v2297_v37 = vadd.f32 %v2296_v59, %v2277_v63 }
 0xc5d   : > { %v2304_v53 = vpack.c.bf16 %v2297_v37, %v2295_v25 }
 0xc5f   : > { %2953 = vmatmul.msk.bf16.vlgmr.msra.gmra.mxu0 %vm1467_vm6, %v2304_v53 }
 0xc62   : > { %v2280_v2 = vpop.f32.mrf.mxu0 }
 0xc63   : > { %v2300_v55 = vadd.f32 %v2299_v10, %v2280_v2 }
 0xc6a   : > { %v2282_v12 = vpop.f32.mrf.mxu0 }
 0xc6b   : > { %v2302_v15 = vadd.f32 %v2301_v18, %v2282_v12 }
 0xc6d   : > { %v2305_v45 = vpack.c.bf16 %v2302_v15, %v2300_v55 }
 0xc6f   : > { %2954 = vmatmul.msk.bf16.gmra.mxu0 %vm1467_vm6, %v2305_v45 }
 0xcdc   : > { %v2346_v6 = vpop.f32.mrf.mxu0 }
 0xcdd   : > { %v2347_v20 = vadd.f32 %v2346_v6, %v2321_v42 }
 0xcdf   : > { %v2356_v22 = vadd.f32 %v3701_v17, %v2347_v20 }
 0xce1   : > { %v2360_v5 = vmax.f32 %v2356_v22, 0.0 }
 0xce4   : > { %v2348_v21 = vpop.f32.mrf.mxu0 }
 0xce5   : > { %v2349_v38 = vadd.f32 %v2348_v21, %v2323_v48 }
 0xce7   : > { %v2357_v39 = vadd.f32 %v3701_v17, %v2349_v38 }
 0xce9   : > { %v2361_v11 = vmax.f32 %v2357_v39, 0.0 }
 0xceb   : > { %v2364_v7 = vpack.c.bf16 %v2361_v11, %v2360_v5 }
 0xcec   : > { %v2351_v13 = vpop.f32.mrf.mxu0 }
 0xced   : > { %2955 = vmatmul.msk.bf16.vlgmr.msra.gmra.mxu1 %vm1467_vm6, %v2364_v7  ;;  %v2352_v34 = vadd.f32 %v2351_v13, %v2326_v52 }
 0xcef   : > { %v2358_v27 = vadd.f32 %v3701_v17, %v2352_v34 }
 0xcf1   : > { %v2362_v33 = vmax.f32 %v2358_v27, 0.0 }
 0xcf4   : > { %v2353_v44 = vpop.f32.mrf.mxu0 }
 0xcf5   : > { %v2354_v47 = vadd.f32 %v2353_v44, %v2328_v14 }
 0xcf7   : > { %v2359_v28 = vadd.f32 %v3701_v17, %v2354_v47 }
 0xcf9   : > { %v2363_v3 = vmax.f32 %v2359_v28, 0.0 }
 0xcfb   : > { %v2365_v36 = vpack.c.bf16 %v2363_v3, %v2362_v33 }
 0xcfd   : > { %2956 = vmatmul.msk.bf16.gmra.mxu1 %vm1467_vm6, %v2365_v36 }
 0xd6a   : > { %v2381_v56 = vpop.f32.mrf.mxu1 }
 0xd6b   : > { %v2391_v19 = vadd.f32 %v2381_v56, %v3836_v1 }
 0xd6d   : > { %v2395_v51 = vadd.f32 %v3715_v54, %v2391_v19 }
 0xd72   : > { %v2383_v50 = vpop.f32.mrf.mxu1 }
 0xd73   : > { %v2392_v17 = vadd.f32 %v2383_v50, %v3831_v40  ;;  %v3077_v40 = vld [vmem:[%s4032_s21] ss:$0 sm:$0xff] }
 0xd75   : > { %v2396_v16 = vadd.f32 %v3715_v54, %v2392_v17 }
 0xd77   : > { %v2399_v62 = vpack.c.bf16 %v2396_v16, %v2395_v51 }
 0xd79   : > { %2965 = vmatmul.msk.bf16.vlgmr.msra.gmra.mxu2 %vm1134_vm8, %v2399_v62 }
 0xd7a   : > { %v2386_v23 = vpop.f32.mrf.mxu1 }
 0xd7b   : > { %v2393_v0 = vadd.f32 %v2386_v23, %v3825_v57 }
 0xd7d   : > { %v2397_v24 = vadd.f32 %v3715_v54, %v2393_v0 }
 0xd82   : > { %v2388_v60 = vpop.f32.mrf.mxu1 }
 0xd83   : > { %v2394_v61 = vadd.f32 %v2388_v60, %v3828_v26 }
 0xd85   : > { %v2398_v1 = vadd.f32 %v3715_v54, %v2394_v61 }
 0xd87   : > { %v2400_v35 = vpack.c.bf16 %v2398_v1, %v2397_v24 }
 0xd89   : > { %2966 = vmatmul.msk.bf16.gmra.mxu2 %vm1134_vm8, %v2400_v35 }
 0xdfc   : > { %v2436_v41 = vpop.f32.mrf.mxu2 }
 0xdfd   : > { %v2437_v46 = vadd.f32 %v3077_v40, %v2436_v41 }
 0xdff   : > { %2526 = vrot.lane.b32.xlu2 %v2437_v46, %s3160_s0  ;;  %v2967_v58 = vmul.f32 -1.442695, %v2437_v46 }
 0xe04   : > { %v2438_v49 = vpop.f32.mrf.mxu2 }
 0xe05   : > { %v2439_v54 = vadd.f32 %v3077_v40, %v2438_v49 }
 0xe07   : > { %v2968_v8 = vmul.f32 -1.442695, %v2439_v54 }
 0xe0c   : > { %v2441_v57 = vpop.f32.mrf.mxu2 }
 0xe0d   : > { %v2442_v29 = vadd.f32 %v3077_v40, %v2441_v57 }
 0xe0f   : > { %2530 = vrot.lane.b32.xlu1 %v2442_v29, %s3160_s0  ;;  %v2969_v30 = vmul.f32 -1.442695, %v2442_v29 }
 0xe11   : > { %3078 = vpow2.f32 %v2969_v30  ;;  %v2542_v30 = vld [vmem:[%s4089_s3] sm:$0x1]  ;;  %s2632_s3 = sshll.u32 %s751_s29, 4  ;;  %s2633_s3 = int_to_ptr.vmem [resolvable:$true] %s2632_s3 }
 0xe14   : > { %v2443_v26 = vpop.f32.mrf.mxu2 }
 0xe15   : > { %v2444_v32 = vadd.f32 %v3077_v40, %v2443_v26 }
 0xe17   : > { %2532 = vrot.lane.b32.xlu1 %v2444_v32, %s3160_s0  ;;  %v2970_v31 = vmul.f32 -1.442695, %v2444_v32  ;;  %v3079_v9 = vpop.eup %3078  ;;  %v3025_v32 = vld [vmem:[%s4033_s22 + $0x18] sm:$0xff] }
 0xe18   : > { %v2460_v63 = vadd.f32 1.0, %v3079_v9 }
 0xe19   : > { %3080 = vpow2.f32 %v2970_v31  ;;  %v3024_v31 = vld [vmem:[%s4033_s22 + $0x10] sm:$0xff] }
 0xe1a   : > { %3082 = vpow2.f32 %v2967_v58  ;;  %vm2497_vm10 = vweird.f32 %v2460_v63  ;;  %v2503_v13 = vand.u32 2147483648, %v2460_v63  ;;  %v2501_v44 = vand.u32 2147483647, %v2460_v63  ;;  %v3023_v58 = vld [vmem:[%s4033_s22 + $0x8] sm:$0xff] }
 0xe1b   : > { %3084 = vpow2.f32 %v2968_v8  ;;  %v3022_v8 = vld [vmem:[%s4033_s22] sm:$0xff] }
 0xe1c   : > { %3086 = vrcp.f32 %v2460_v63  ;;  %v2504_v36 = vor.u32 1.1754944e-38, %v2503_v13  ;;  %vm2502_vm14 = vcmp.eq.f32.partialorder %v2501_v44, 8.507059e+37 }
 0xe1f   : > { %2528 = vrot.lane.b32.xlu1 %v2439_v54, %s3160_s0  ;;  %v3081_v59 = vpop.eup %3080  ;;  %s4092_s0 = sld [smem:[#allocation27_spill]] }
 0xe20   : > { %v2461_v25 = vadd.f32 1.0, %v3081_v59  ;;  %v3083_v37 = vpop.eup %3082 }
 0xe21   : > { %v3085_v53 = vpop.eup %3084  ;;  %v3941_v10 = vadd.f32 1.0, %v3083_v37 }
 0xe22   : > { %3088 = vrcp.f32 %v2461_v25  ;;  %v3943_v2 = vadd.f32 1.0, %v3085_v53  ;;  %v3087_v18 = vpop.eup %3086  ;;  %v2518_v34 = vand.u32 2147483648, %v2461_v25  ;;  %vm2512_vm12 = vweird.f32 %v2461_v25 }
 0xe23   : > { %3090 = vrcp.f32 %v3941_v10  ;;  %v2493_v55 = vmul.f32 %v3087_v18, %v2460_v63  ;;  %vm2498_vm7 = vweird.f32 %v3087_v18  ;;  %v2516_v27 = vand.u32 2147483647, %v2461_v25 }
 0xe24   : > { %3092 = vrcp.f32 %v3943_v2  ;;  %vm3949_vm11 = vmor %vm2497_vm10, %vm2498_vm7  ;;  %v2519_v43 = vor.u32 1.1754944e-38, %v2518_v34  ;;  %vm2467_vm2 = vweird.f32 %v3941_v10  ;;  %v2473_v62 = vand.u32 2147483648, %v3941_v10 }
 0xe25   : > { %v2494_v42 = vsub.f32 1.0, %v2493_v55  ;;  %vm2517_vm15 = vcmp.eq.f32.partialorder %v2516_v27, 8.507059e+37  ;;  %v2488_v23 = vand.u32 2147483648, %v3943_v2  ;;  %v2471_v0 = vand.u32 2147483647, %v3941_v10  ;;  %s2630_s30 = scalar_lea.hbm %s4092_s0, %s4091_s27  ;;  %s3114_s7 = scalar_lea.hbm %s4092_s0, 2 }
 0xe26   : > { %vm2482_vm4 = vweird.f32 %v3943_v2  ;;  %v2486_v61 = vand.u32 2147483647, %v3943_v2  ;;  %v2474_v40 = vor.u32 1.1754944e-38, %v2473_v62  ;;  %s2634_s24 = sshll.u32 %s2630_s30, 4  ;;  %vm2619_vm10 = vcmask 8192   ;;  %s2635_s24 = int_to_ptr.hbm [resolvable:$true] %s2634_s24 }
 0xe27   : > { %v2495_v21 = vmul.f32 %v3087_v18, %v2494_v42  ;;  %v2489_v41 = vor.u32 1.1754944e-38, %v2488_v23  ;;  %vm2472_vm7 = vcmp.eq.f32.partialorder %v2471_v0, 8.507059e+37  ;;  %s3108_s23 = sshra.s32 %s2635_s24, 4  ;;  %s3109_s23 = int_to_ptr.hbm [resolvable:$true] %s3108_s23 }
 0xe28   : > { %v3089_v12 = vpop.eup %3088  ;;  %s3110_s26 = scalar_lea.hbm %s3109_s23, 1  ;;  %p3115_p1 = scmp.lt.s32.totalorder %s3109_s23, %s4092_s0 }
 0xe29   : > { %v2508_v15 = vmul.f32 %v3089_v12, %v2461_v25  ;;  %v3091_v45 = vpop.eup %3090  ;;  %v2496_v11 = vadd.f32 %v3087_v18, %v2495_v21  ;;  %vm2513_vm9 = vweird.f32 %v3089_v12  ;;  %p3111_p12 = scmp.ne.s32.totalorder %s3109_s23, %s3110_s26  ;;  %p3116_p2 = scmp.lt.s32.totalorder %s3114_s7, %s3110_s26 }
 0xe2a   : > { %v3093_v48 = vpop.eup %3092  ;;  %v2463_v20 = vmul.f32 %v3091_v45, %v3941_v10  ;;  %vm2514_vm13 = vmor %vm2512_vm12, %vm2513_vm9  ;;  %vm2468_vm0 = vweird.f32 %v3091_v45  ;;  %vm2487_vm9 = vcmp.eq.f32.partialorder %v2486_v61, 8.507059e+37 }
 0xe2b   : > { %v2509_v6 = vsub.f32 1.0, %v2508_v15  ;;  %v2478_v38 = vmul.f32 %v3093_v48, %v3943_v2  ;;  %v2500_v28 = vsel %vm3949_vm11, %v3087_v18, %v2496_v11  ;;  %vm2483_vm1 = vweird.f32 %v3093_v48  ;;  %vm2469_vm3 = vmor %vm2467_vm2, %vm2468_vm0  ;;  %p3112_p13 = pnand %p3111_p12, %p3319_p5  ;;  %p3117_p3 = por %p3116_p2, %p3115_p1 }
 0xe2c   : > { %v2464_v39 = vsub.f32 1.0, %v2463_v20  ;;  %v2505_v56 = vsel %vm2502_vm14, %v2504_v36, %v2500_v28  ;;  %vm2484_vm5 = vmor %vm2482_vm4, %vm2483_vm1 }
 0xe2d   : > { %v2510_v22 = vmul.f32 %v3089_v12, %v2509_v6  ;;  %v2479_v7 = vsub.f32 1.0, %v2478_v38  ;;  %p3113_p0 = pneg %p3112_p13 }
 0xe2e   : > { %v2465_v47 = vmul.f32 %v3091_v45, %v2464_v39 }
 0xe2f   : > { %v2511_v52 = vadd.f32 %v3089_v12, %v2510_v22  ;;  %v2480_v3 = vmul.f32 %v3093_v48, %v2479_v7  ;;  %p3118_p4 = pnand %p3117_p3, %p3113_p0 }
 0xe30   : > { %v2466_v4 = vadd.f32 %v3091_v45, %v2465_v47 }
 0xe31   : > { %v2515_v33 = vsel %vm2514_vm13, %v3089_v12, %v2511_v52  ;;  %v2481_v16 = vadd.f32 %v3093_v48, %v2480_v3  ;;  %v4094_v12 = vld [vmem:[#allocation14_spill] sm:$0xff] }
 0xe32   : > { %v2520_v19 = vsel %vm2517_vm15, %v2519_v43, %v2515_v33  ;;  %v2470_v24 = vsel %vm2469_vm3, %v3091_v45, %v2466_v4 }
 0xe33   : > { %v2485_v1 = vsel %vm2484_vm5, %v3093_v48, %v2481_v16  ;;  %v2475_v46 = vsel %vm2472_vm7, %v2474_v40, %v2470_v24 }
 0xe34   : > { %v2490_v49 = vsel %vm2487_vm9, %v2489_v41, %v2485_v1 }
 0xe59   : > { %v2527_v35 = vpop.permute.xlu2 %2526 }
 0xe5a   : > { %v2538_v29 = vmul.f32 %v2527_v35, %v2475_v46 }
 0xe81   : > { %v2531_v5 = vpop.permute.xlu1 %2530 }
 0xe82   : > { %v2540_v17 = vmul.f32 %v2531_v5, %v2505_v56 }
 0xe89   : > { %v2533_v50 = vpop.permute.xlu1 %2532 }
 0xe8a   : > { %v2541_v51 = vmul.f32 %v2533_v50, %v2520_v19 }
 0xe8c   : > { %v2544_v60 = vpack.c.bf16 %v2541_v51, %v2540_v17 }
 0xe8e   : > { %2554 = vmatpush.bf16.msrb.mxu3 %v2544_v60 }
 0xe91   : > { %v2529_v57 = vpop.permute.xlu1 %2528 }
 0xe92   : > { %v2539_v26 = vmul.f32 %v2529_v57, %v2490_v49 }
 0xe94   : > { %v2543_v54 = vpack.c.bf16 %v2539_v26, %v2538_v29 }
 0xe96   : > { %2555 = vmatpush.bf16.msrb.mxu3 %v2543_v54 }
 0xe99   : > { %2971 = vmatmul.msk.bf16.vlgmr.msrb.gmra.mxu3 %vm1134_vm8, %v2542_v30  ;;  %vm2611_vm8 = vcmask 517120  }
 0xe9a   : > { %2601 = vmatpush.bf16.msra.mxu3 %v3025_v32 }
 0xe9e   : > { %2602 = vmatpush.bf16.msra.mxu3 %v3024_v31 }
 0xea2   : > { %2603 = vmatpush.bf16.msra.mxu3 %v3023_v58 }
 0xea6   : > { %2604 = vmatpush.bf16.msra.mxu3 %v3022_v8 }
 0xf1c   : > { %v2557_v9 = vpop.f32.mrf.mxu3 }
 0xf1d   : > { %v2561_v59 = vpack.c.bf16 %v2557_v9, %v2557_v9 }
 0xf1f   : > { %2988 = vmatmul.msk.bf16.vlgmr.msra.gmra.mxu3 %vm1467_vm6, %v2561_v59 }
 0xf24   : > { %v2559_v63 = vpop.f32.mrf.mxu3 }
 0xfa2   : > { %v2606_v25 = vpop.f32.mrf.mxu3 }
 0xfa3   : > { %v2610_v37 = vmul.f32 %v2606_v25, %v2606_v25 }
 0xfa5   : > { %v2612_v53 = vsel %vm2611_vm8, %v2610_v37, 0.0 }
 0xfa6   : > { %2613 = vadd.xlane.f32.xlu0 %v2612_v53 }
 0xfaa   : > { %v2608_v10 = vpop.f32.mrf.mxu3 }
0x1019   : > { %v2614_v2 = vpop.xlane.xlu0 %2613 }
0x101a   : > { %v2615_v18 = vsub.f32 0.0, %v2614_v2 }
0x101c   : > { %v2617_v55 = vperm.slane %v2615_v18, %v4094_v12 }
0x101e   : > { %2620 = vst.msk [vmem:[%s751_s29] sm:$0x1] %vm2619_vm10, %v2617_v55 }
0x101f   : > { %3121 = shalt.err (!%p3118_p4)
}
0x1020   : > { %3026 = dma.vmem_to_hbm [thread:$0]  (%p3319_p5), %s2633_s3, 16, %s2635_s24, %s2622_s4  }
0x1021 PF: > { %s4095_s25 = sld [smem:[#allocation8_spill]] }
0x1022   : > { %s4096_s2 = sld [smem:[#allocation5_spill]] }
0x1027   : > { %p3032_p7 = scmp.ge.s32.totalorder %s4095_s25, 2 }
0x1028   : > { %s2646_s29 = sand.u32 1, %s4096_s2  }
0x1029   : > { %p3029_p8 = pnand %p3032_p7, %p3323_p6  ;;  %s2647_s5 = scalar_lea.sflag [#allocation3], %s2646_s29 }
0x102b   : > { %p3030_p9 = pneg %p3029_p8 }
0x102d   : > { %3139 = dma.done.wait (%p3030_p9), %s2647_s5, 16  }
0x102e   : > { %3141 = vsyncadd (%p3030_p9), %s2647_s5, 4294967280  ;;  %s4098_s25 = sld [smem:[#allocation10_spill]] }
0x102f   : > { %s4099_s4 = sld [smem:[#allocation6_spill]] }
0x1030   : > { %s4100_s30 = sld [smem:[#allocation7_spill]] }
0x1031   : > { %s4101_s24 = sld [smem:[#allocation11_spill]] }
0x1034   : > { %p33_p10 = scmp.ge.s32.totalorder %s4098_s25, 4  }
0x1036   :  { %35 = sbr.rel (!%p33_p10) target bundleno = 13 (0xd), region = 156 }
0x103b   :  { %2652 = vsyncpa [#allocation3], 1 }
0x103c   :  { %2654 = vsyncpa [#allocation3 + $0x1], 1 }

</bundles_post_ra>
